<compile_context>
chip_gen: v7x
topology: tpu7x:2x2x1
jax: 0.10.0
libtpu: 0.0.40
codegen_flags: <defaults>
</compile_context>

<pallas_src>
import jax
import jax.numpy as jnp
from jax.experimental import pallas as pl
from jax.experimental.pallas import tpu as pltpu


# ----------------------------------------------------------------------------
# Pallas kernel: 2-layer bidirectional GRU + head, fully fused, one grid step.
# Lane layouts:
#   hidden  h        : (B, 2H)  = [fwd | rev]
#   gates   gi / gh  : (B, 6H)  = [r_f r_r | z_f z_r | n_f n_r]
#   layer-1 input v  : (B, 4H)  = [hs0[t] | hs0[T-1-t]]
# The reverse direction consumes time-flipped gi, so unrolled step t computes fwd@t
# and rev@(T-1-t) simultaneously; hs[T-1] then holds both directions' final states.
# ----------------------------------------------------------------------------
def _fused_bigru_kernel(gi0_ref, h0_ref, whh0_ref, bhn0_ref,
                        wih1_ref, bi1_ref, whh1_ref, bhn1_ref,
                        wout_ref, bout_ref,
                        out_ref, hn_ref):
    T, B, _ = gi0_ref.shape
    H = hn_ref.shape[-1]
    D = 2 * H

    def gru_layer(gi_list, h_init, whh, bhn):
        h = h_init
        hs = []
        for t in range(T):                       # static unroll, T = 8
            gi = gi_list[t]
            gh = jnp.dot(h, whh, preferred_element_type=jnp.float32)
            r = jax.nn.sigmoid(gi[:, 0:D] + gh[:, 0:D])
            z = jax.nn.sigmoid(gi[:, D:2 * D] + gh[:, D:2 * D])
            n = jnp.tanh(gi[:, 2 * D:3 * D] + r * (gh[:, 2 * D:3 * D] + bhn))
            h = (1.0 - z) * n + z * h
            hs.append(h)
        return hs

    # ---- layer 0 (gi0 precomputed in wrapper: one (T*B,300)x(300,6H) matmul) ----
    h0_l0 = jnp.concatenate([h0_ref[0], h0_ref[1]], axis=-1).astype(jnp.float32)
    gi0 = [gi0_ref[t].astype(jnp.float32) for t in range(T)]
    hs0 = gru_layer(gi0, h0_l0, whh0_ref[...], bhn0_ref[...])

    # ---- layer-1 input projection: one (T*B, 4H) x (4H, 6H) matmul ----
    v = jnp.concatenate(
        [jnp.concatenate([hs0[t], hs0[T - 1 - t]], axis=-1) for t in range(T)],
        axis=0)                                                      # (T*B, 4H)
    gi1_all = jnp.dot(v, wih1_ref[...],
                      preferred_element_type=jnp.float32) + bi1_ref[...]
    gi1 = [gi1_all[t * B:(t + 1) * B, :] for t in range(T)]

    # ---- layer 1 ----
    h0_l1 = jnp.concatenate([h0_ref[2], h0_ref[3]], axis=-1).astype(jnp.float32)
    hs1 = gru_layer(gi1, h0_l1, whh1_ref[...], bhn1_ref[...])

    # ---- final hidden states: hs*[T-1] = [fwd final | rev final] ----
    hn_ref[0] = hs0[T - 1][:, 0:H].astype(hn_ref.dtype)
    hn_ref[1] = hs0[T - 1][:, H:2 * H].astype(hn_ref.dtype)
    hn_ref[2] = hs1[T - 1][:, 0:H].astype(hn_ref.dtype)
    hn_ref[3] = hs1[T - 1][:, H:2 * H].astype(hn_ref.dtype)

    # ---- linear head on cat(output1[0], output1[-1]); wout rows pre-permuted ----
    u = jnp.concatenate([hs1[0], hs1[T - 1]], axis=-1)               # (B, 4H)
    head = jnp.dot(u, wout_ref[...],
                   preferred_element_type=jnp.float32) + bout_ref[...]
    out_ref[...] = head.astype(out_ref.dtype)


def fused_bigru(gi0, h0, packed, *, out_size):
    T, B, _ = gi0.shape
    H = h0.shape[-1]

    def full(shape):
        return pl.BlockSpec(shape, lambda i, _n=len(shape): (0,) * _n)

    ins = [gi0, h0, packed["whh0"], packed["bhn0"], packed["wih1"],
           packed["bi1"], packed["whh1"], packed["bhn1"],
           packed["wout"], packed["bout"]]
    out, hidden = pl.pallas_call(
        _fused_bigru_kernel,
        out_shape=(jax.ShapeDtypeStruct((B, out_size), jnp.float32),
                   jax.ShapeDtypeStruct((4, B, H), jnp.float32)),
        grid_spec=pltpu.PrefetchScalarGridSpec(
            num_scalar_prefetch=0,
            grid=(1,),
            in_specs=[full(a.shape) for a in ins],
            out_specs=[full((B, out_size)), full((4, B, H))],
        ),
        compiler_params=pltpu.CompilerParams(
            dimension_semantics=("arbitrary",)),
    )(*ins)
    return out, hidden


# ----------------------------------------------------------------------------
# Parameter init (PyTorch-style uniform(-1/sqrt(H), 1/sqrt(H))) and one-time packing.
# ----------------------------------------------------------------------------
def init_params(key, input_size=300, hidden_size=32, output_size=2, num_layers=2):
    H = hidden_size
    bound = 1.0 / jnp.sqrt(jnp.float32(H))
    params = {}
    for layer in range(num_layers):
        d_in = input_size if layer == 0 else 2 * H
        for suffix in ("", "_reverse"):
            key, k1, k2, k3, k4 = jax.random.split(key, 5)
            params[f"l{layer}{suffix}"] = {
                "w_ih": jax.random.uniform(k1, (3 * H, d_in), jnp.float32, -bound, bound),
                "w_hh": jax.random.uniform(k2, (3 * H, H), jnp.float32, -bound, bound),
                "b_ih": jax.random.uniform(k3, (3 * H,), jnp.float32, -bound, bound),
                "b_hh": jax.random.uniform(k4, (3 * H,), jnp.float32, -bound, bound),
            }
    key, k1, k2 = jax.random.split(key, 3)
    lin_bound = 1.0 / jnp.sqrt(jnp.float32(4 * H))
    params["out_w"] = jax.random.uniform(k1, (output_size, 4 * H), jnp.float32,
                                         -lin_bound, lin_bound)
    params["out_b"] = jax.random.uniform(k2, (output_size,), jnp.float32,
                                         -lin_bound, lin_bound)
    return params


def pack_params(params, hidden_size=32):
    """One-time re-layout of PyTorch-style GRU weights into the kernel's packed forms."""
    H = hidden_size
    f32 = jnp.float32

    def gate_major(w_f, w_r):
        # (3H, Din) x2 -> (Din, 6H), column blocks [r_f r_r z_f z_r n_f n_r]
        cols = []
        for g in range(3):
            cols.append(w_f[g * H:(g + 1) * H, :].T)
            cols.append(w_r[g * H:(g + 1) * H, :].T)
        return jnp.concatenate(cols, axis=1).astype(f32)

    def fold_bias(p_f, p_r):
        # b_ih for all gates + b_hh folded for r,z only; (6H,)
        cols = []
        for g in range(3):
            bf = p_f["b_ih"][g * H:(g + 1) * H]
            br = p_r["b_ih"][g * H:(g + 1) * H]
            if g < 2:
                bf = bf + p_f["b_hh"][g * H:(g + 1) * H]
                br = br + p_r["b_hh"][g * H:(g + 1) * H]
            cols += [bf, br]
        return jnp.concatenate(cols).astype(f32)

    def block_diag_whh(w_f, w_r):
        # (2H, 6H): row block of direction d only feeds direction-d columns per gate.
        W = jnp.zeros((2 * H, 6 * H), f32)
        for g in range(3):
            W = W.at[0:H, 2 * g * H:2 * g * H + H].set(w_f[g * H:(g + 1) * H, :].T)
            W = W.at[H:2 * H, 2 * g * H + H:2 * (g + 1) * H].set(w_r[g * H:(g + 1) * H, :].T)
        return W

    p0f, p0r = params["l0"], params["l0_reverse"]
    p1f, p1r = params["l1"], params["l1_reverse"]
    packed = {
        "wih0": gate_major(p0f["w_ih"], p0r["w_ih"]),                              # (300, 6H)
        "bi0": fold_bias(p0f, p0r),                                                # (6H,)
        "whh0": block_diag_whh(p0f["w_hh"], p0r["w_hh"]),                          # (2H, 6H)
        "bhn0": jnp.concatenate([p0f["b_hh"][2 * H:], p0r["b_hh"][2 * H:]])[None, :].astype(f32),
        "bi1": fold_bias(p1f, p1r)[None, :],                                       # (1, 6H)
        "whh1": block_diag_whh(p1f["w_hh"], p1r["w_hh"]),                          # (2H, 6H)
        "bhn1": jnp.concatenate([p1f["b_hh"][2 * H:], p1r["b_hh"][2 * H:]])[None, :].astype(f32),
    }
    # Layer-1 input projection against v_t = [hs0[t] | hs0[T-1-t]]:
    #   v cols 0:H   = fwd out @ t      -> fwd gate cols via w_ih1_f[:, 0:H]
    #   v cols H:2H  = rev out @ T-1-t  -> rev gate cols via w_ih1_r[:, H:2H]
    #   v cols 2H:3H = fwd out @ T-1-t  -> rev gate cols via w_ih1_r[:, 0:H]
    #   v cols 3H:4H = rev out @ t      -> fwd gate cols via w_ih1_f[:, H:2H]
    wf, wr = p1f["w_ih"], p1r["w_ih"]                                              # (3H, 2H)
    W1 = jnp.zeros((4 * H, 6 * H), f32)
    for g in range(3):
        fcol = slice(2 * g * H, 2 * g * H + H)
        rcol = slice(2 * g * H + H, 2 * (g + 1) * H)
        grow = slice(g * H, (g + 1) * H)
        W1 = W1.at[0:H, fcol].set(wf[grow, 0:H].T)
        W1 = W1.at[3 * H:4 * H, fcol].set(wf[grow, H:2 * H].T)
        W1 = W1.at[2 * H:3 * H, rcol].set(wr[grow, 0:H].T)
        W1 = W1.at[H:2 * H, rcol].set(wr[grow, H:2 * H].T)
    packed["wih1"] = W1                                                            # (4H, 6H)
    # Head acts on u = [fwd1@0 | rev1@T-1 | fwd1@T-1 | rev1@0]; PyTorch output2 layout
    # is [fwd1@0 | rev1@0 | fwd1@T-1 | rev1@T-1] -> permute W_out column blocks.
    Wo = params["out_w"]                                                           # (out, 4H)
    packed["wout"] = jnp.concatenate(
        [Wo[:, 0:H].T, Wo[:, 3 * H:4 * H].T, Wo[:, 2 * H:3 * H].T, Wo[:, H:2 * H].T],
        axis=0).astype(f32)                                                        # (4H, out)
    packed["bout"] = params["out_b"][None, :].astype(f32)                          # (1, out)
    return packed


# ----------------------------------------------------------------------------
# Full RNN.forward (GRU, num_layers=2, bidirectional=True)
# ----------------------------------------------------------------------------
@jax.jit
def rnn_forward(packed, x, h0):
    """x: (T, B, input_size); h0: (4, B, H). Returns (output (B, out), hidden (4, B, H))."""
    T, B, _ = x.shape
    H = h0.shape[-1]
    # Hoisted layer-0 input projection (single MXU-friendly matmul), biases folded.
    gi_all = jnp.einsum('tbd,dk->tbk', x, packed["wih0"]) + packed["bi0"]
    # Time-flip only the reverse-direction columns -> static time indices in-kernel.
    rev_cols = ((jnp.arange(gi_all.shape[-1]) // H) % 2) == 1
    gi0 = jnp.where(rev_cols, gi_all[::-1], gi_all)
    return fused_bigru(gi0, h0, packed, out_size=packed["wout"].shape[-1])


# ----------------------------------------------------------------------------
# Pure-JAX reference (straightforward nn.GRU semantics) for a numerical self-check.
# ----------------------------------------------------------------------------
def gru_reference(params, x, h0, H):
    def cell(p, xt, h):
        gi = xt @ p["w_ih"].T + p["b_ih"]
        gh = h @ p["w_hh"].T + p["b_hh"]
        r = jax.nn.sigmoid(gi[:, 0:H] + gh[:, 0:H])
        z = jax.nn.sigmoid(gi[:, H:2 * H] + gh[:, H:2 * H])
        n = jnp.tanh(gi[:, 2 * H:3 * H] + r * gh[:, 2 * H:3 * H])
        return (1.0 - z) * n + z * h

    def run_dir(p, xs, h):
        outs = []
        for t in range(xs.shape[0]):
            h = cell(p, xs[t], h)
            outs.append(h)
        return jnp.stack(outs), h

    layer_in = x
    h_finals = []
    for l in range(2):
        pf, pr = params[f"l{l}"], params[f"l{l}_reverse"]
        of, hf = run_dir(pf, layer_in, h0[2 * l])
        orev, hr = run_dir(pr, layer_in[::-1], h0[2 * l + 1])
        layer_in = jnp.concatenate([of, orev[::-1]], axis=-1)
        h_finals += [hf, hr]
    hidden = jnp.stack(h_finals)
    out2 = jnp.concatenate([layer_in[0], layer_in[-1]], axis=-1)
    out = out2 @ params["out_w"].T + params["out_b"]
    return out, hidden


if __name__ == "__main__":
    INPUT_SIZE, HIDDEN, OUTPUT, NUM_LAYERS, SEQ, BATCH = 300, 32, 2, 2, 8, 2

    key = jax.random.PRNGKey(0)
    kx, kh, kp = jax.random.split(key, 3)
    x = jax.random.normal(kx, (SEQ, BATCH, INPUT_SIZE), jnp.float32)
    h0 = jax.random.normal(kh, (NUM_LAYERS * 2, BATCH, HIDDEN), jnp.float32)
    params = init_params(kp, INPUT_SIZE, HIDDEN, OUTPUT, NUM_LAYERS)
    packed = pack_params(params, HIDDEN)

    out, hidden = rnn_forward(packed, x, h0)
    jax.block_until_ready((out, hidden))
    assert out.shape == (BATCH, OUTPUT)
    assert hidden.shape == (NUM_LAYERS * 2, BATCH, HIDDEN)

    # Numerical self-check against the pure-JAX nn.GRU reference.
    out_ref, hid_ref = gru_reference(params, x, h0, HIDDEN)
    assert jnp.allclose(out, out_ref, atol=5e-3, rtol=5e-3), "head output mismatch"
    assert jnp.allclose(hidden, hid_ref, atol=5e-3, rtol=5e-3), "hidden state mismatch"
    print("KERNEL_OK")
</pallas_src>

<mosaic_0001>
module attributes {stable_mosaic.version = 11 : i64} {
  func.func @_fused_bigru_kernel(%arg0: i32, %arg1: memref<8x2x192xf32, #tpu.memory_space<vmem>>, %arg2: memref<4x2x32xf32, #tpu.memory_space<vmem>>, %arg3: memref<64x192xf32, #tpu.memory_space<vmem>>, %arg4: memref<1x64xf32, #tpu.memory_space<vmem>>, %arg5: memref<128x192xf32, #tpu.memory_space<vmem>>, %arg6: memref<1x192xf32, #tpu.memory_space<vmem>>, %arg7: memref<64x192xf32, #tpu.memory_space<vmem>>, %arg8: memref<1x64xf32, #tpu.memory_space<vmem>>, %arg9: memref<128x2xf32, #tpu.memory_space<vmem>>, %arg10: memref<1x2xf32, #tpu.memory_space<vmem>>, %arg11: memref<2x2xf32, #tpu.memory_space<vmem>>, %arg12: memref<4x2x32xf32, #tpu.memory_space<vmem>>) attributes {dimension_semantics = [#tpu.dimension_semantics<arbitrary>], iteration_bounds = array<i64: 1>, scalar_prefetch = 0 : i64, scratch_operands = 0 : i64, tpu.core_type = #tpu.core_type<tc>, window_params = [{pipeline_mode = #tpu.pipeline_mode<synchronous>, transform_indices = @transform_0, window_bounds = array<i64: 8, 2, 192>}, {pipeline_mode = #tpu.pipeline_mode<synchronous>, transform_indices = @transform_1, window_bounds = array<i64: 4, 2, 32>}, {pipeline_mode = #tpu.pipeline_mode<synchronous>, transform_indices = @transform_2, window_bounds = array<i64: 64, 192>}, {pipeline_mode = #tpu.pipeline_mode<synchronous>, transform_indices = @transform_3, window_bounds = array<i64: 1, 64>}, {pipeline_mode = #tpu.pipeline_mode<synchronous>, transform_indices = @transform_4, window_bounds = array<i64: 128, 192>}, {pipeline_mode = #tpu.pipeline_mode<synchronous>, transform_indices = @transform_5, window_bounds = array<i64: 1, 192>}, {pipeline_mode = #tpu.pipeline_mode<synchronous>, transform_indices = @transform_6, window_bounds = array<i64: 64, 192>}, {pipeline_mode = #tpu.pipeline_mode<synchronous>, transform_indices = @transform_7, window_bounds = array<i64: 1, 64>}, {pipeline_mode = #tpu.pipeline_mode<synchronous>, transform_indices = @transform_8, window_bounds = array<i64: 128, 2>}, {pipeline_mode = #tpu.pipeline_mode<synchronous>, transform_indices = @transform_9, window_bounds = array<i64: 1, 2>}, {pipeline_mode = #tpu.pipeline_mode<synchronous>, transform_indices = @transform_10, window_bounds = array<i64: 2, 2>}, {pipeline_mode = #tpu.pipeline_mode<synchronous>, transform_indices = @transform_11, window_bounds = array<i64: 4, 2, 32>}]} {
    %c0 = arith.constant 0 : index
    %c0_0 = arith.constant 0 : index
    %c0_1 = arith.constant 0 : index
    %0 = vector.load %arg2[%c0, %c0_0, %c0_1] : memref<4x2x32xf32, #tpu.memory_space<vmem>>, vector<1x2x32xf32>
    %1 = vector.shape_cast %0 : vector<1x2x32xf32> to vector<2x32xf32>
    %c1 = arith.constant 1 : index
    %c0_2 = arith.constant 0 : index
    %c0_3 = arith.constant 0 : index
    %2 = vector.load %arg2[%c1, %c0_2, %c0_3] : memref<4x2x32xf32, #tpu.memory_space<vmem>>, vector<1x2x32xf32>
    %3 = vector.shape_cast %2 : vector<1x2x32xf32> to vector<2x32xf32>
    %4 = tpu.concatenate %1, %3 in 1 : vector<2x32xf32>, vector<2x32xf32> -> vector<2x64xf32>
    %c0_4 = arith.constant 0 : index
    %c0_5 = arith.constant 0 : index
    %c0_6 = arith.constant 0 : index
    %5 = vector.load %arg1[%c0_4, %c0_5, %c0_6] : memref<8x2x192xf32, #tpu.memory_space<vmem>>, vector<1x2x192xf32>
    %6 = vector.shape_cast %5 : vector<1x2x192xf32> to vector<2x192xf32>
    %c1_7 = arith.constant 1 : index
    %c0_8 = arith.constant 0 : index
    %c0_9 = arith.constant 0 : index
    %7 = vector.load %arg1[%c1_7, %c0_8, %c0_9] : memref<8x2x192xf32, #tpu.memory_space<vmem>>, vector<1x2x192xf32>
    %8 = vector.shape_cast %7 : vector<1x2x192xf32> to vector<2x192xf32>
    %c2 = arith.constant 2 : index
    %c0_10 = arith.constant 0 : index
    %c0_11 = arith.constant 0 : index
    %9 = vector.load %arg1[%c2, %c0_10, %c0_11] : memref<8x2x192xf32, #tpu.memory_space<vmem>>, vector<1x2x192xf32>
    %10 = vector.shape_cast %9 : vector<1x2x192xf32> to vector<2x192xf32>
    %c3 = arith.constant 3 : index
    %c0_12 = arith.constant 0 : index
    %c0_13 = arith.constant 0 : index
    %11 = vector.load %arg1[%c3, %c0_12, %c0_13] : memref<8x2x192xf32, #tpu.memory_space<vmem>>, vector<1x2x192xf32>
    %12 = vector.shape_cast %11 : vector<1x2x192xf32> to vector<2x192xf32>
    %c4 = arith.constant 4 : index
    %c0_14 = arith.constant 0 : index
    %c0_15 = arith.constant 0 : index
    %13 = vector.load %arg1[%c4, %c0_14, %c0_15] : memref<8x2x192xf32, #tpu.memory_space<vmem>>, vector<1x2x192xf32>
    %14 = vector.shape_cast %13 : vector<1x2x192xf32> to vector<2x192xf32>
    %c5 = arith.constant 5 : index
    %c0_16 = arith.constant 0 : index
    %c0_17 = arith.constant 0 : index
    %15 = vector.load %arg1[%c5, %c0_16, %c0_17] : memref<8x2x192xf32, #tpu.memory_space<vmem>>, vector<1x2x192xf32>
    %16 = vector.shape_cast %15 : vector<1x2x192xf32> to vector<2x192xf32>
    %c6 = arith.constant 6 : index
    %c0_18 = arith.constant 0 : index
    %c0_19 = arith.constant 0 : index
    %17 = vector.load %arg1[%c6, %c0_18, %c0_19] : memref<8x2x192xf32, #tpu.memory_space<vmem>>, vector<1x2x192xf32>
    %18 = vector.shape_cast %17 : vector<1x2x192xf32> to vector<2x192xf32>
    %c7 = arith.constant 7 : index
    %c0_20 = arith.constant 0 : index
    %c0_21 = arith.constant 0 : index
    %19 = vector.load %arg1[%c7, %c0_20, %c0_21] : memref<8x2x192xf32, #tpu.memory_space<vmem>>, vector<1x2x192xf32>
    %20 = vector.shape_cast %19 : vector<1x2x192xf32> to vector<2x192xf32>
    %c0_22 = arith.constant 0 : index
    %c0_23 = arith.constant 0 : index
    %21 = vector.load %arg3[%c0_22, %c0_23] : memref<64x192xf32, #tpu.memory_space<vmem>>, vector<64x192xf32>
    %c0_24 = arith.constant 0 : index
    %c0_25 = arith.constant 0 : index
    %22 = vector.load %arg4[%c0_24, %c0_25] : memref<1x64xf32, #tpu.memory_space<vmem>>, vector<1x64xf32>
    %cst = arith.constant dense<0.000000e+00> : vector<2x192xf32>
    %23 = tpu.matmul %4, %21, %cst {dimension_numbers = #tpu.dot_dimension_numbers<[1], [0], [0], [1], [0, 0, 1, 1], [], []>} : vector<2x64xf32>, vector<64x192xf32>, vector<2x192xf32> -> vector<2x192xf32>
    %24 = vector.extract_strided_slice %6 {offsets = [0, 0], sizes = [2, 64], strides = [1, 1]} : vector<2x192xf32> to vector<2x64xf32>
    %25 = vector.extract_strided_slice %23 {offsets = [0, 0], sizes = [2, 64], strides = [1, 1]} : vector<2x192xf32> to vector<2x64xf32>
    %26 = arith.addf %24, %25 : vector<2x64xf32>
    %27 = arith.negf %26 : vector<2x64xf32>
    %28 = math.exp %27 : vector<2x64xf32>
    %cst_26 = arith.constant 1.000000e+00 : f32
    %29 = vector.broadcast %cst_26 : f32 to vector<2x64xf32>
    %30 = arith.addf %29, %28 : vector<2x64xf32>
    %31 = arith.divf %29, %30 : vector<2x64xf32>
    %32 = vector.extract_strided_slice %6 {offsets = [0, 64], sizes = [2, 64], strides = [1, 1]} : vector<2x192xf32> to vector<2x64xf32>
    %33 = vector.extract_strided_slice %23 {offsets = [0, 64], sizes = [2, 64], strides = [1, 1]} : vector<2x192xf32> to vector<2x64xf32>
    %34 = arith.addf %32, %33 : vector<2x64xf32>
    %35 = arith.negf %34 : vector<2x64xf32>
    %36 = math.exp %35 : vector<2x64xf32>
    %cst_27 = arith.constant 1.000000e+00 : f32
    %37 = vector.broadcast %cst_27 : f32 to vector<2x64xf32>
    %38 = arith.addf %37, %36 : vector<2x64xf32>
    %39 = arith.divf %37, %38 : vector<2x64xf32>
    %40 = vector.extract_strided_slice %6 {offsets = [0, 128], sizes = [2, 64], strides = [1, 1]} : vector<2x192xf32> to vector<2x64xf32>
    %41 = vector.extract_strided_slice %23 {offsets = [0, 128], sizes = [2, 64], strides = [1, 1]} : vector<2x192xf32> to vector<2x64xf32>
    %42 = vector.broadcast %22 : vector<1x64xf32> to vector<2x64xf32>
    %43 = arith.addf %41, %42 : vector<2x64xf32>
    %44 = arith.mulf %31, %43 : vector<2x64xf32>
    %45 = arith.addf %40, %44 : vector<2x64xf32>
    %46 = math.tanh %45 : vector<2x64xf32>
    %cst_28 = arith.constant 1.000000e+00 : f32
    %47 = vector.broadcast %cst_28 : f32 to vector<2x64xf32>
    %48 = arith.subf %47, %39 : vector<2x64xf32>
    %49 = arith.mulf %48, %46 : vector<2x64xf32>
    %50 = arith.mulf %39, %4 : vector<2x64xf32>
    %51 = arith.addf %49, %50 : vector<2x64xf32>
    %cst_29 = arith.constant dense<0.000000e+00> : vector<2x192xf32>
    %52 = tpu.matmul %51, %21, %cst_29 {dimension_numbers = #tpu.dot_dimension_numbers<[1], [0], [0], [1], [0, 0, 1, 1], [], []>} : vector<2x64xf32>, vector<64x192xf32>, vector<2x192xf32> -> vector<2x192xf32>
    %53 = vector.extract_strided_slice %8 {offsets = [0, 0], sizes = [2, 64], strides = [1, 1]} : vector<2x192xf32> to vector<2x64xf32>
    %54 = vector.extract_strided_slice %52 {offsets = [0, 0], sizes = [2, 64], strides = [1, 1]} : vector<2x192xf32> to vector<2x64xf32>
    %55 = arith.addf %53, %54 : vector<2x64xf32>
    %56 = arith.negf %55 : vector<2x64xf32>
    %57 = math.exp %56 : vector<2x64xf32>
    %cst_30 = arith.constant 1.000000e+00 : f32
    %58 = vector.broadcast %cst_30 : f32 to vector<2x64xf32>
    %59 = arith.addf %58, %57 : vector<2x64xf32>
    %60 = arith.divf %58, %59 : vector<2x64xf32>
    %61 = vector.extract_strided_slice %8 {offsets = [0, 64], sizes = [2, 64], strides = [1, 1]} : vector<2x192xf32> to vector<2x64xf32>
    %62 = vector.extract_strided_slice %52 {offsets = [0, 64], sizes = [2, 64], strides = [1, 1]} : vector<2x192xf32> to vector<2x64xf32>
    %63 = arith.addf %61, %62 : vector<2x64xf32>
    %64 = arith.negf %63 : vector<2x64xf32>
    %65 = math.exp %64 : vector<2x64xf32>
    %cst_31 = arith.constant 1.000000e+00 : f32
    %66 = vector.broadcast %cst_31 : f32 to vector<2x64xf32>
    %67 = arith.addf %66, %65 : vector<2x64xf32>
    %68 = arith.divf %66, %67 : vector<2x64xf32>
    %69 = vector.extract_strided_slice %8 {offsets = [0, 128], sizes = [2, 64], strides = [1, 1]} : vector<2x192xf32> to vector<2x64xf32>
    %70 = vector.extract_strided_slice %52 {offsets = [0, 128], sizes = [2, 64], strides = [1, 1]} : vector<2x192xf32> to vector<2x64xf32>
    %71 = vector.broadcast %22 : vector<1x64xf32> to vector<2x64xf32>
    %72 = arith.addf %70, %71 : vector<2x64xf32>
    %73 = arith.mulf %60, %72 : vector<2x64xf32>
    %74 = arith.addf %69, %73 : vector<2x64xf32>
    %75 = math.tanh %74 : vector<2x64xf32>
    %cst_32 = arith.constant 1.000000e+00 : f32
    %76 = vector.broadcast %cst_32 : f32 to vector<2x64xf32>
    %77 = arith.subf %76, %68 : vector<2x64xf32>
    %78 = arith.mulf %77, %75 : vector<2x64xf32>
    %79 = arith.mulf %68, %51 : vector<2x64xf32>
    %80 = arith.addf %78, %79 : vector<2x64xf32>
    %cst_33 = arith.constant dense<0.000000e+00> : vector<2x192xf32>
    %81 = tpu.matmul %80, %21, %cst_33 {dimension_numbers = #tpu.dot_dimension_numbers<[1], [0], [0], [1], [0, 0, 1, 1], [], []>} : vector<2x64xf32>, vector<64x192xf32>, vector<2x192xf32> -> vector<2x192xf32>
    %82 = vector.extract_strided_slice %10 {offsets = [0, 0], sizes = [2, 64], strides = [1, 1]} : vector<2x192xf32> to vector<2x64xf32>
    %83 = vector.extract_strided_slice %81 {offsets = [0, 0], sizes = [2, 64], strides = [1, 1]} : vector<2x192xf32> to vector<2x64xf32>
    %84 = arith.addf %82, %83 : vector<2x64xf32>
    %85 = arith.negf %84 : vector<2x64xf32>
    %86 = math.exp %85 : vector<2x64xf32>
    %cst_34 = arith.constant 1.000000e+00 : f32
    %87 = vector.broadcast %cst_34 : f32 to vector<2x64xf32>
    %88 = arith.addf %87, %86 : vector<2x64xf32>
    %89 = arith.divf %87, %88 : vector<2x64xf32>
    %90 = vector.extract_strided_slice %10 {offsets = [0, 64], sizes = [2, 64], strides = [1, 1]} : vector<2x192xf32> to vector<2x64xf32>
    %91 = vector.extract_strided_slice %81 {offsets = [0, 64], sizes = [2, 64], strides = [1, 1]} : vector<2x192xf32> to vector<2x64xf32>
    %92 = arith.addf %90, %91 : vector<2x64xf32>
    %93 = arith.negf %92 : vector<2x64xf32>
    %94 = math.exp %93 : vector<2x64xf32>
    %cst_35 = arith.constant 1.000000e+00 : f32
    %95 = vector.broadcast %cst_35 : f32 to vector<2x64xf32>
    %96 = arith.addf %95, %94 : vector<2x64xf32>
    %97 = arith.divf %95, %96 : vector<2x64xf32>
    %98 = vector.extract_strided_slice %10 {offsets = [0, 128], sizes = [2, 64], strides = [1, 1]} : vector<2x192xf32> to vector<2x64xf32>
    %99 = vector.extract_strided_slice %81 {offsets = [0, 128], sizes = [2, 64], strides = [1, 1]} : vector<2x192xf32> to vector<2x64xf32>
    %100 = vector.broadcast %22 : vector<1x64xf32> to vector<2x64xf32>
    %101 = arith.addf %99, %100 : vector<2x64xf32>
    %102 = arith.mulf %89, %101 : vector<2x64xf32>
    %103 = arith.addf %98, %102 : vector<2x64xf32>
    %104 = math.tanh %103 : vector<2x64xf32>
    %cst_36 = arith.constant 1.000000e+00 : f32
    %105 = vector.broadcast %cst_36 : f32 to vector<2x64xf32>
    %106 = arith.subf %105, %97 : vector<2x64xf32>
    %107 = arith.mulf %106, %104 : vector<2x64xf32>
    %108 = arith.mulf %97, %80 : vector<2x64xf32>
    %109 = arith.addf %107, %108 : vector<2x64xf32>
    %cst_37 = arith.constant dense<0.000000e+00> : vector<2x192xf32>
    %110 = tpu.matmul %109, %21, %cst_37 {dimension_numbers = #tpu.dot_dimension_numbers<[1], [0], [0], [1], [0, 0, 1, 1], [], []>} : vector<2x64xf32>, vector<64x192xf32>, vector<2x192xf32> -> vector<2x192xf32>
    %111 = vector.extract_strided_slice %12 {offsets = [0, 0], sizes = [2, 64], strides = [1, 1]} : vector<2x192xf32> to vector<2x64xf32>
    %112 = vector.extract_strided_slice %110 {offsets = [0, 0], sizes = [2, 64], strides = [1, 1]} : vector<2x192xf32> to vector<2x64xf32>
    %113 = arith.addf %111, %112 : vector<2x64xf32>
    %114 = arith.negf %113 : vector<2x64xf32>
    %115 = math.exp %114 : vector<2x64xf32>
    %cst_38 = arith.constant 1.000000e+00 : f32
    %116 = vector.broadcast %cst_38 : f32 to vector<2x64xf32>
    %117 = arith.addf %116, %115 : vector<2x64xf32>
    %118 = arith.divf %116, %117 : vector<2x64xf32>
    %119 = vector.extract_strided_slice %12 {offsets = [0, 64], sizes = [2, 64], strides = [1, 1]} : vector<2x192xf32> to vector<2x64xf32>
    %120 = vector.extract_strided_slice %110 {offsets = [0, 64], sizes = [2, 64], strides = [1, 1]} : vector<2x192xf32> to vector<2x64xf32>
    %121 = arith.addf %119, %120 : vector<2x64xf32>
    %122 = arith.negf %121 : vector<2x64xf32>
    %123 = math.exp %122 : vector<2x64xf32>
    %cst_39 = arith.constant 1.000000e+00 : f32
    %124 = vector.broadcast %cst_39 : f32 to vector<2x64xf32>
    %125 = arith.addf %124, %123 : vector<2x64xf32>
    %126 = arith.divf %124, %125 : vector<2x64xf32>
    %127 = vector.extract_strided_slice %12 {offsets = [0, 128], sizes = [2, 64], strides = [1, 1]} : vector<2x192xf32> to vector<2x64xf32>
    %128 = vector.extract_strided_slice %110 {offsets = [0, 128], sizes = [2, 64], strides = [1, 1]} : vector<2x192xf32> to vector<2x64xf32>
    %129 = vector.broadcast %22 : vector<1x64xf32> to vector<2x64xf32>
    %130 = arith.addf %128, %129 : vector<2x64xf32>
    %131 = arith.mulf %118, %130 : vector<2x64xf32>
    %132 = arith.addf %127, %131 : vector<2x64xf32>
    %133 = math.tanh %132 : vector<2x64xf32>
    %cst_40 = arith.constant 1.000000e+00 : f32
    %134 = vector.broadcast %cst_40 : f32 to vector<2x64xf32>
    %135 = arith.subf %134, %126 : vector<2x64xf32>
    %136 = arith.mulf %135, %133 : vector<2x64xf32>
    %137 = arith.mulf %126, %109 : vector<2x64xf32>
    %138 = arith.addf %136, %137 : vector<2x64xf32>
    %cst_41 = arith.constant dense<0.000000e+00> : vector<2x192xf32>
    %139 = tpu.matmul %138, %21, %cst_41 {dimension_numbers = #tpu.dot_dimension_numbers<[1], [0], [0], [1], [0, 0, 1, 1], [], []>} : vector<2x64xf32>, vector<64x192xf32>, vector<2x192xf32> -> vector<2x192xf32>
    %140 = vector.extract_strided_slice %14 {offsets = [0, 0], sizes = [2, 64], strides = [1, 1]} : vector<2x192xf32> to vector<2x64xf32>
    %141 = vector.extract_strided_slice %139 {offsets = [0, 0], sizes = [2, 64], strides = [1, 1]} : vector<2x192xf32> to vector<2x64xf32>
    %142 = arith.addf %140, %141 : vector<2x64xf32>
    %143 = arith.negf %142 : vector<2x64xf32>
    %144 = math.exp %143 : vector<2x64xf32>
    %cst_42 = arith.constant 1.000000e+00 : f32
    %145 = vector.broadcast %cst_42 : f32 to vector<2x64xf32>
    %146 = arith.addf %145, %144 : vector<2x64xf32>
    %147 = arith.divf %145, %146 : vector<2x64xf32>
    %148 = vector.extract_strided_slice %14 {offsets = [0, 64], sizes = [2, 64], strides = [1, 1]} : vector<2x192xf32> to vector<2x64xf32>
    %149 = vector.extract_strided_slice %139 {offsets = [0, 64], sizes = [2, 64], strides = [1, 1]} : vector<2x192xf32> to vector<2x64xf32>
    %150 = arith.addf %148, %149 : vector<2x64xf32>
    %151 = arith.negf %150 : vector<2x64xf32>
    %152 = math.exp %151 : vector<2x64xf32>
    %cst_43 = arith.constant 1.000000e+00 : f32
    %153 = vector.broadcast %cst_43 : f32 to vector<2x64xf32>
    %154 = arith.addf %153, %152 : vector<2x64xf32>
    %155 = arith.divf %153, %154 : vector<2x64xf32>
    %156 = vector.extract_strided_slice %14 {offsets = [0, 128], sizes = [2, 64], strides = [1, 1]} : vector<2x192xf32> to vector<2x64xf32>
    %157 = vector.extract_strided_slice %139 {offsets = [0, 128], sizes = [2, 64], strides = [1, 1]} : vector<2x192xf32> to vector<2x64xf32>
    %158 = vector.broadcast %22 : vector<1x64xf32> to vector<2x64xf32>
    %159 = arith.addf %157, %158 : vector<2x64xf32>
    %160 = arith.mulf %147, %159 : vector<2x64xf32>
    %161 = arith.addf %156, %160 : vector<2x64xf32>
    %162 = math.tanh %161 : vector<2x64xf32>
    %cst_44 = arith.constant 1.000000e+00 : f32
    %163 = vector.broadcast %cst_44 : f32 to vector<2x64xf32>
    %164 = arith.subf %163, %155 : vector<2x64xf32>
    %165 = arith.mulf %164, %162 : vector<2x64xf32>
    %166 = arith.mulf %155, %138 : vector<2x64xf32>
    %167 = arith.addf %165, %166 : vector<2x64xf32>
    %cst_45 = arith.constant dense<0.000000e+00> : vector<2x192xf32>
    %168 = tpu.matmul %167, %21, %cst_45 {dimension_numbers = #tpu.dot_dimension_numbers<[1], [0], [0], [1], [0, 0, 1, 1], [], []>} : vector<2x64xf32>, vector<64x192xf32>, vector<2x192xf32> -> vector<2x192xf32>
    %169 = vector.extract_strided_slice %16 {offsets = [0, 0], sizes = [2, 64], strides = [1, 1]} : vector<2x192xf32> to vector<2x64xf32>
    %170 = vector.extract_strided_slice %168 {offsets = [0, 0], sizes = [2, 64], strides = [1, 1]} : vector<2x192xf32> to vector<2x64xf32>
    %171 = arith.addf %169, %170 : vector<2x64xf32>
    %172 = arith.negf %171 : vector<2x64xf32>
    %173 = math.exp %172 : vector<2x64xf32>
    %cst_46 = arith.constant 1.000000e+00 : f32
    %174 = vector.broadcast %cst_46 : f32 to vector<2x64xf32>
    %175 = arith.addf %174, %173 : vector<2x64xf32>
    %176 = arith.divf %174, %175 : vector<2x64xf32>
    %177 = vector.extract_strided_slice %16 {offsets = [0, 64], sizes = [2, 64], strides = [1, 1]} : vector<2x192xf32> to vector<2x64xf32>
    %178 = vector.extract_strided_slice %168 {offsets = [0, 64], sizes = [2, 64], strides = [1, 1]} : vector<2x192xf32> to vector<2x64xf32>
    %179 = arith.addf %177, %178 : vector<2x64xf32>
    %180 = arith.negf %179 : vector<2x64xf32>
    %181 = math.exp %180 : vector<2x64xf32>
    %cst_47 = arith.constant 1.000000e+00 : f32
    %182 = vector.broadcast %cst_47 : f32 to vector<2x64xf32>
    %183 = arith.addf %182, %181 : vector<2x64xf32>
    %184 = arith.divf %182, %183 : vector<2x64xf32>
    %185 = vector.extract_strided_slice %16 {offsets = [0, 128], sizes = [2, 64], strides = [1, 1]} : vector<2x192xf32> to vector<2x64xf32>
    %186 = vector.extract_strided_slice %168 {offsets = [0, 128], sizes = [2, 64], strides = [1, 1]} : vector<2x192xf32> to vector<2x64xf32>
    %187 = vector.broadcast %22 : vector<1x64xf32> to vector<2x64xf32>
    %188 = arith.addf %186, %187 : vector<2x64xf32>
    %189 = arith.mulf %176, %188 : vector<2x64xf32>
    %190 = arith.addf %185, %189 : vector<2x64xf32>
    %191 = math.tanh %190 : vector<2x64xf32>
    %cst_48 = arith.constant 1.000000e+00 : f32
    %192 = vector.broadcast %cst_48 : f32 to vector<2x64xf32>
    %193 = arith.subf %192, %184 : vector<2x64xf32>
    %194 = arith.mulf %193, %191 : vector<2x64xf32>
    %195 = arith.mulf %184, %167 : vector<2x64xf32>
    %196 = arith.addf %194, %195 : vector<2x64xf32>
    %cst_49 = arith.constant dense<0.000000e+00> : vector<2x192xf32>
    %197 = tpu.matmul %196, %21, %cst_49 {dimension_numbers = #tpu.dot_dimension_numbers<[1], [0], [0], [1], [0, 0, 1, 1], [], []>} : vector<2x64xf32>, vector<64x192xf32>, vector<2x192xf32> -> vector<2x192xf32>
    %198 = vector.extract_strided_slice %18 {offsets = [0, 0], sizes = [2, 64], strides = [1, 1]} : vector<2x192xf32> to vector<2x64xf32>
    %199 = vector.extract_strided_slice %197 {offsets = [0, 0], sizes = [2, 64], strides = [1, 1]} : vector<2x192xf32> to vector<2x64xf32>
    %200 = arith.addf %198, %199 : vector<2x64xf32>
    %201 = arith.negf %200 : vector<2x64xf32>
    %202 = math.exp %201 : vector<2x64xf32>
    %cst_50 = arith.constant 1.000000e+00 : f32
    %203 = vector.broadcast %cst_50 : f32 to vector<2x64xf32>
    %204 = arith.addf %203, %202 : vector<2x64xf32>
    %205 = arith.divf %203, %204 : vector<2x64xf32>
    %206 = vector.extract_strided_slice %18 {offsets = [0, 64], sizes = [2, 64], strides = [1, 1]} : vector<2x192xf32> to vector<2x64xf32>
    %207 = vector.extract_strided_slice %197 {offsets = [0, 64], sizes = [2, 64], strides = [1, 1]} : vector<2x192xf32> to vector<2x64xf32>
    %208 = arith.addf %206, %207 : vector<2x64xf32>
    %209 = arith.negf %208 : vector<2x64xf32>
    %210 = math.exp %209 : vector<2x64xf32>
    %cst_51 = arith.constant 1.000000e+00 : f32
    %211 = vector.broadcast %cst_51 : f32 to vector<2x64xf32>
    %212 = arith.addf %211, %210 : vector<2x64xf32>
    %213 = arith.divf %211, %212 : vector<2x64xf32>
    %214 = vector.extract_strided_slice %18 {offsets = [0, 128], sizes = [2, 64], strides = [1, 1]} : vector<2x192xf32> to vector<2x64xf32>
    %215 = vector.extract_strided_slice %197 {offsets = [0, 128], sizes = [2, 64], strides = [1, 1]} : vector<2x192xf32> to vector<2x64xf32>
    %216 = vector.broadcast %22 : vector<1x64xf32> to vector<2x64xf32>
    %217 = arith.addf %215, %216 : vector<2x64xf32>
    %218 = arith.mulf %205, %217 : vector<2x64xf32>
    %219 = arith.addf %214, %218 : vector<2x64xf32>
    %220 = math.tanh %219 : vector<2x64xf32>
    %cst_52 = arith.constant 1.000000e+00 : f32
    %221 = vector.broadcast %cst_52 : f32 to vector<2x64xf32>
    %222 = arith.subf %221, %213 : vector<2x64xf32>
    %223 = arith.mulf %222, %220 : vector<2x64xf32>
    %224 = arith.mulf %213, %196 : vector<2x64xf32>
    %225 = arith.addf %223, %224 : vector<2x64xf32>
    %cst_53 = arith.constant dense<0.000000e+00> : vector<2x192xf32>
    %226 = tpu.matmul %225, %21, %cst_53 {dimension_numbers = #tpu.dot_dimension_numbers<[1], [0], [0], [1], [0, 0, 1, 1], [], []>} : vector<2x64xf32>, vector<64x192xf32>, vector<2x192xf32> -> vector<2x192xf32>
    %227 = vector.extract_strided_slice %20 {offsets = [0, 0], sizes = [2, 64], strides = [1, 1]} : vector<2x192xf32> to vector<2x64xf32>
    %228 = vector.extract_strided_slice %226 {offsets = [0, 0], sizes = [2, 64], strides = [1, 1]} : vector<2x192xf32> to vector<2x64xf32>
    %229 = arith.addf %227, %228 : vector<2x64xf32>
    %230 = arith.negf %229 : vector<2x64xf32>
    %231 = math.exp %230 : vector<2x64xf32>
    %cst_54 = arith.constant 1.000000e+00 : f32
    %232 = vector.broadcast %cst_54 : f32 to vector<2x64xf32>
    %233 = arith.addf %232, %231 : vector<2x64xf32>
    %234 = arith.divf %232, %233 : vector<2x64xf32>
    %235 = vector.extract_strided_slice %20 {offsets = [0, 64], sizes = [2, 64], strides = [1, 1]} : vector<2x192xf32> to vector<2x64xf32>
    %236 = vector.extract_strided_slice %226 {offsets = [0, 64], sizes = [2, 64], strides = [1, 1]} : vector<2x192xf32> to vector<2x64xf32>
    %237 = arith.addf %235, %236 : vector<2x64xf32>
    %238 = arith.negf %237 : vector<2x64xf32>
    %239 = math.exp %238 : vector<2x64xf32>
    %cst_55 = arith.constant 1.000000e+00 : f32
    %240 = vector.broadcast %cst_55 : f32 to vector<2x64xf32>
    %241 = arith.addf %240, %239 : vector<2x64xf32>
    %242 = arith.divf %240, %241 : vector<2x64xf32>
    %243 = vector.extract_strided_slice %20 {offsets = [0, 128], sizes = [2, 64], strides = [1, 1]} : vector<2x192xf32> to vector<2x64xf32>
    %244 = vector.extract_strided_slice %226 {offsets = [0, 128], sizes = [2, 64], strides = [1, 1]} : vector<2x192xf32> to vector<2x64xf32>
    %245 = vector.broadcast %22 : vector<1x64xf32> to vector<2x64xf32>
    %246 = arith.addf %244, %245 : vector<2x64xf32>
    %247 = arith.mulf %234, %246 : vector<2x64xf32>
    %248 = arith.addf %243, %247 : vector<2x64xf32>
    %249 = math.tanh %248 : vector<2x64xf32>
    %cst_56 = arith.constant 1.000000e+00 : f32
    %250 = vector.broadcast %cst_56 : f32 to vector<2x64xf32>
    %251 = arith.subf %250, %242 : vector<2x64xf32>
    %252 = arith.mulf %251, %249 : vector<2x64xf32>
    %253 = arith.mulf %242, %225 : vector<2x64xf32>
    %254 = arith.addf %252, %253 : vector<2x64xf32>
    %255 = tpu.concatenate %51, %254 in 1 : vector<2x64xf32>, vector<2x64xf32> -> vector<2x128xf32>
    %256 = tpu.concatenate %80, %225 in 1 : vector<2x64xf32>, vector<2x64xf32> -> vector<2x128xf32>
    %257 = tpu.concatenate %109, %196 in 1 : vector<2x64xf32>, vector<2x64xf32> -> vector<2x128xf32>
    %258 = tpu.concatenate %138, %167 in 1 : vector<2x64xf32>, vector<2x64xf32> -> vector<2x128xf32>
    %259 = tpu.concatenate %167, %138 in 1 : vector<2x64xf32>, vector<2x64xf32> -> vector<2x128xf32>
    %260 = tpu.concatenate %196, %109 in 1 : vector<2x64xf32>, vector<2x64xf32> -> vector<2x128xf32>
    %261 = tpu.concatenate %225, %80 in 1 : vector<2x64xf32>, vector<2x64xf32> -> vector<2x128xf32>
    %262 = tpu.concatenate %254, %51 in 1 : vector<2x64xf32>, vector<2x64xf32> -> vector<2x128xf32>
    %263 = tpu.concatenate %255, %256, %257, %258, %259, %260, %261, %262 in 0 : vector<2x128xf32>, vector<2x128xf32>, vector<2x128xf32>, vector<2x128xf32>, vector<2x128xf32>, vector<2x128xf32>, vector<2x128xf32>, vector<2x128xf32> -> vector<16x128xf32>
    %c0_57 = arith.constant 0 : index
    %c0_58 = arith.constant 0 : index
    %264 = vector.load %arg5[%c0_57, %c0_58] : memref<128x192xf32, #tpu.memory_space<vmem>>, vector<128x192xf32>
    %cst_59 = arith.constant dense<0.000000e+00> : vector<16x192xf32>
    %265 = tpu.matmul %263, %264, %cst_59 {dimension_numbers = #tpu.dot_dimension_numbers<[1], [0], [0], [1], [0, 0, 1, 1], [], []>} : vector<16x128xf32>, vector<128x192xf32>, vector<16x192xf32> -> vector<16x192xf32>
    %c0_60 = arith.constant 0 : index
    %c0_61 = arith.constant 0 : index
    %266 = vector.load %arg6[%c0_60, %c0_61] : memref<1x192xf32, #tpu.memory_space<vmem>>, vector<1x192xf32>
    %267 = vector.broadcast %266 : vector<1x192xf32> to vector<16x192xf32>
    %268 = arith.addf %265, %267 : vector<16x192xf32>
    %269 = vector.extract_strided_slice %268 {offsets = [0, 0], sizes = [2, 192], strides = [1, 1]} : vector<16x192xf32> to vector<2x192xf32>
    %270 = vector.extract_strided_slice %268 {offsets = [2, 0], sizes = [2, 192], strides = [1, 1]} : vector<16x192xf32> to vector<2x192xf32>
    %271 = vector.extract_strided_slice %268 {offsets = [4, 0], sizes = [2, 192], strides = [1, 1]} : vector<16x192xf32> to vector<2x192xf32>
    %272 = vector.extract_strided_slice %268 {offsets = [6, 0], sizes = [2, 192], strides = [1, 1]} : vector<16x192xf32> to vector<2x192xf32>
    %273 = vector.extract_strided_slice %268 {offsets = [8, 0], sizes = [2, 192], strides = [1, 1]} : vector<16x192xf32> to vector<2x192xf32>
    %274 = vector.extract_strided_slice %268 {offsets = [10, 0], sizes = [2, 192], strides = [1, 1]} : vector<16x192xf32> to vector<2x192xf32>
    %275 = vector.extract_strided_slice %268 {offsets = [12, 0], sizes = [2, 192], strides = [1, 1]} : vector<16x192xf32> to vector<2x192xf32>
    %276 = vector.extract_strided_slice %268 {offsets = [14, 0], sizes = [2, 192], strides = [1, 1]} : vector<16x192xf32> to vector<2x192xf32>
    %c2_62 = arith.constant 2 : index
    %c0_63 = arith.constant 0 : index
    %c0_64 = arith.constant 0 : index
    %277 = vector.load %arg2[%c2_62, %c0_63, %c0_64] : memref<4x2x32xf32, #tpu.memory_space<vmem>>, vector<1x2x32xf32>
    %278 = vector.shape_cast %277 : vector<1x2x32xf32> to vector<2x32xf32>
    %c3_65 = arith.constant 3 : index
    %c0_66 = arith.constant 0 : index
    %c0_67 = arith.constant 0 : index
    %279 = vector.load %arg2[%c3_65, %c0_66, %c0_67] : memref<4x2x32xf32, #tpu.memory_space<vmem>>, vector<1x2x32xf32>
    %280 = vector.shape_cast %279 : vector<1x2x32xf32> to vector<2x32xf32>
    %281 = tpu.concatenate %278, %280 in 1 : vector<2x32xf32>, vector<2x32xf32> -> vector<2x64xf32>
    %c0_68 = arith.constant 0 : index
    %c0_69 = arith.constant 0 : index
    %282 = vector.load %arg7[%c0_68, %c0_69] : memref<64x192xf32, #tpu.memory_space<vmem>>, vector<64x192xf32>
    %c0_70 = arith.constant 0 : index
    %c0_71 = arith.constant 0 : index
    %283 = vector.load %arg8[%c0_70, %c0_71] : memref<1x64xf32, #tpu.memory_space<vmem>>, vector<1x64xf32>
    %cst_72 = arith.constant dense<0.000000e+00> : vector<2x192xf32>
    %284 = tpu.matmul %281, %282, %cst_72 {dimension_numbers = #tpu.dot_dimension_numbers<[1], [0], [0], [1], [0, 0, 1, 1], [], []>} : vector<2x64xf32>, vector<64x192xf32>, vector<2x192xf32> -> vector<2x192xf32>
    %285 = vector.extract_strided_slice %269 {offsets = [0, 0], sizes = [2, 64], strides = [1, 1]} : vector<2x192xf32> to vector<2x64xf32>
    %286 = vector.extract_strided_slice %284 {offsets = [0, 0], sizes = [2, 64], strides = [1, 1]} : vector<2x192xf32> to vector<2x64xf32>
    %287 = arith.addf %285, %286 : vector<2x64xf32>
    %288 = arith.negf %287 : vector<2x64xf32>
    %289 = math.exp %288 : vector<2x64xf32>
    %cst_73 = arith.constant 1.000000e+00 : f32
    %290 = vector.broadcast %cst_73 : f32 to vector<2x64xf32>
    %291 = arith.addf %290, %289 : vector<2x64xf32>
    %292 = arith.divf %290, %291 : vector<2x64xf32>
    %293 = vector.extract_strided_slice %269 {offsets = [0, 64], sizes = [2, 64], strides = [1, 1]} : vector<2x192xf32> to vector<2x64xf32>
    %294 = vector.extract_strided_slice %284 {offsets = [0, 64], sizes = [2, 64], strides = [1, 1]} : vector<2x192xf32> to vector<2x64xf32>
    %295 = arith.addf %293, %294 : vector<2x64xf32>
    %296 = arith.negf %295 : vector<2x64xf32>
    %297 = math.exp %296 : vector<2x64xf32>
    %cst_74 = arith.constant 1.000000e+00 : f32
    %298 = vector.broadcast %cst_74 : f32 to vector<2x64xf32>
    %299 = arith.addf %298, %297 : vector<2x64xf32>
    %300 = arith.divf %298, %299 : vector<2x64xf32>
    %301 = vector.extract_strided_slice %269 {offsets = [0, 128], sizes = [2, 64], strides = [1, 1]} : vector<2x192xf32> to vector<2x64xf32>
    %302 = vector.extract_strided_slice %284 {offsets = [0, 128], sizes = [2, 64], strides = [1, 1]} : vector<2x192xf32> to vector<2x64xf32>
    %303 = vector.broadcast %283 : vector<1x64xf32> to vector<2x64xf32>
    %304 = arith.addf %302, %303 : vector<2x64xf32>
    %305 = arith.mulf %292, %304 : vector<2x64xf32>
    %306 = arith.addf %301, %305 : vector<2x64xf32>
    %307 = math.tanh %306 : vector<2x64xf32>
    %cst_75 = arith.constant 1.000000e+00 : f32
    %308 = vector.broadcast %cst_75 : f32 to vector<2x64xf32>
    %309 = arith.subf %308, %300 : vector<2x64xf32>
    %310 = arith.mulf %309, %307 : vector<2x64xf32>
    %311 = arith.mulf %300, %281 : vector<2x64xf32>
    %312 = arith.addf %310, %311 : vector<2x64xf32>
    %cst_76 = arith.constant dense<0.000000e+00> : vector<2x192xf32>
    %313 = tpu.matmul %312, %282, %cst_76 {dimension_numbers = #tpu.dot_dimension_numbers<[1], [0], [0], [1], [0, 0, 1, 1], [], []>} : vector<2x64xf32>, vector<64x192xf32>, vector<2x192xf32> -> vector<2x192xf32>
    %314 = vector.extract_strided_slice %270 {offsets = [0, 0], sizes = [2, 64], strides = [1, 1]} : vector<2x192xf32> to vector<2x64xf32>
    %315 = vector.extract_strided_slice %313 {offsets = [0, 0], sizes = [2, 64], strides = [1, 1]} : vector<2x192xf32> to vector<2x64xf32>
    %316 = arith.addf %314, %315 : vector<2x64xf32>
    %317 = arith.negf %316 : vector<2x64xf32>
    %318 = math.exp %317 : vector<2x64xf32>
    %cst_77 = arith.constant 1.000000e+00 : f32
    %319 = vector.broadcast %cst_77 : f32 to vector<2x64xf32>
    %320 = arith.addf %319, %318 : vector<2x64xf32>
    %321 = arith.divf %319, %320 : vector<2x64xf32>
    %322 = vector.extract_strided_slice %270 {offsets = [0, 64], sizes = [2, 64], strides = [1, 1]} : vector<2x192xf32> to vector<2x64xf32>
    %323 = vector.extract_strided_slice %313 {offsets = [0, 64], sizes = [2, 64], strides = [1, 1]} : vector<2x192xf32> to vector<2x64xf32>
    %324 = arith.addf %322, %323 : vector<2x64xf32>
    %325 = arith.negf %324 : vector<2x64xf32>
    %326 = math.exp %325 : vector<2x64xf32>
    %cst_78 = arith.constant 1.000000e+00 : f32
    %327 = vector.broadcast %cst_78 : f32 to vector<2x64xf32>
    %328 = arith.addf %327, %326 : vector<2x64xf32>
    %329 = arith.divf %327, %328 : vector<2x64xf32>
    %330 = vector.extract_strided_slice %270 {offsets = [0, 128], sizes = [2, 64], strides = [1, 1]} : vector<2x192xf32> to vector<2x64xf32>
    %331 = vector.extract_strided_slice %313 {offsets = [0, 128], sizes = [2, 64], strides = [1, 1]} : vector<2x192xf32> to vector<2x64xf32>
    %332 = vector.broadcast %283 : vector<1x64xf32> to vector<2x64xf32>
    %333 = arith.addf %331, %332 : vector<2x64xf32>
    %334 = arith.mulf %321, %333 : vector<2x64xf32>
    %335 = arith.addf %330, %334 : vector<2x64xf32>
    %336 = math.tanh %335 : vector<2x64xf32>
    %cst_79 = arith.constant 1.000000e+00 : f32
    %337 = vector.broadcast %cst_79 : f32 to vector<2x64xf32>
    %338 = arith.subf %337, %329 : vector<2x64xf32>
    %339 = arith.mulf %338, %336 : vector<2x64xf32>
    %340 = arith.mulf %329, %312 : vector<2x64xf32>
    %341 = arith.addf %339, %340 : vector<2x64xf32>
    %cst_80 = arith.constant dense<0.000000e+00> : vector<2x192xf32>
    %342 = tpu.matmul %341, %282, %cst_80 {dimension_numbers = #tpu.dot_dimension_numbers<[1], [0], [0], [1], [0, 0, 1, 1], [], []>} : vector<2x64xf32>, vector<64x192xf32>, vector<2x192xf32> -> vector<2x192xf32>
    %343 = vector.extract_strided_slice %271 {offsets = [0, 0], sizes = [2, 64], strides = [1, 1]} : vector<2x192xf32> to vector<2x64xf32>
    %344 = vector.extract_strided_slice %342 {offsets = [0, 0], sizes = [2, 64], strides = [1, 1]} : vector<2x192xf32> to vector<2x64xf32>
    %345 = arith.addf %343, %344 : vector<2x64xf32>
    %346 = arith.negf %345 : vector<2x64xf32>
    %347 = math.exp %346 : vector<2x64xf32>
    %cst_81 = arith.constant 1.000000e+00 : f32
    %348 = vector.broadcast %cst_81 : f32 to vector<2x64xf32>
    %349 = arith.addf %348, %347 : vector<2x64xf32>
    %350 = arith.divf %348, %349 : vector<2x64xf32>
    %351 = vector.extract_strided_slice %271 {offsets = [0, 64], sizes = [2, 64], strides = [1, 1]} : vector<2x192xf32> to vector<2x64xf32>
    %352 = vector.extract_strided_slice %342 {offsets = [0, 64], sizes = [2, 64], strides = [1, 1]} : vector<2x192xf32> to vector<2x64xf32>
    %353 = arith.addf %351, %352 : vector<2x64xf32>
    %354 = arith.negf %353 : vector<2x64xf32>
    %355 = math.exp %354 : vector<2x64xf32>
    %cst_82 = arith.constant 1.000000e+00 : f32
    %356 = vector.broadcast %cst_82 : f32 to vector<2x64xf32>
    %357 = arith.addf %356, %355 : vector<2x64xf32>
    %358 = arith.divf %356, %357 : vector<2x64xf32>
    %359 = vector.extract_strided_slice %271 {offsets = [0, 128], sizes = [2, 64], strides = [1, 1]} : vector<2x192xf32> to vector<2x64xf32>
    %360 = vector.extract_strided_slice %342 {offsets = [0, 128], sizes = [2, 64], strides = [1, 1]} : vector<2x192xf32> to vector<2x64xf32>
    %361 = vector.broadcast %283 : vector<1x64xf32> to vector<2x64xf32>
    %362 = arith.addf %360, %361 : vector<2x64xf32>
    %363 = arith.mulf %350, %362 : vector<2x64xf32>
    %364 = arith.addf %359, %363 : vector<2x64xf32>
    %365 = math.tanh %364 : vector<2x64xf32>
    %cst_83 = arith.constant 1.000000e+00 : f32
    %366 = vector.broadcast %cst_83 : f32 to vector<2x64xf32>
    %367 = arith.subf %366, %358 : vector<2x64xf32>
    %368 = arith.mulf %367, %365 : vector<2x64xf32>
    %369 = arith.mulf %358, %341 : vector<2x64xf32>
    %370 = arith.addf %368, %369 : vector<2x64xf32>
    %cst_84 = arith.constant dense<0.000000e+00> : vector<2x192xf32>
    %371 = tpu.matmul %370, %282, %cst_84 {dimension_numbers = #tpu.dot_dimension_numbers<[1], [0], [0], [1], [0, 0, 1, 1], [], []>} : vector<2x64xf32>, vector<64x192xf32>, vector<2x192xf32> -> vector<2x192xf32>
    %372 = vector.extract_strided_slice %272 {offsets = [0, 0], sizes = [2, 64], strides = [1, 1]} : vector<2x192xf32> to vector<2x64xf32>
    %373 = vector.extract_strided_slice %371 {offsets = [0, 0], sizes = [2, 64], strides = [1, 1]} : vector<2x192xf32> to vector<2x64xf32>
    %374 = arith.addf %372, %373 : vector<2x64xf32>
    %375 = arith.negf %374 : vector<2x64xf32>
    %376 = math.exp %375 : vector<2x64xf32>
    %cst_85 = arith.constant 1.000000e+00 : f32
    %377 = vector.broadcast %cst_85 : f32 to vector<2x64xf32>
    %378 = arith.addf %377, %376 : vector<2x64xf32>
    %379 = arith.divf %377, %378 : vector<2x64xf32>
    %380 = vector.extract_strided_slice %272 {offsets = [0, 64], sizes = [2, 64], strides = [1, 1]} : vector<2x192xf32> to vector<2x64xf32>
    %381 = vector.extract_strided_slice %371 {offsets = [0, 64], sizes = [2, 64], strides = [1, 1]} : vector<2x192xf32> to vector<2x64xf32>
    %382 = arith.addf %380, %381 : vector<2x64xf32>
    %383 = arith.negf %382 : vector<2x64xf32>
    %384 = math.exp %383 : vector<2x64xf32>
    %cst_86 = arith.constant 1.000000e+00 : f32
    %385 = vector.broadcast %cst_86 : f32 to vector<2x64xf32>
    %386 = arith.addf %385, %384 : vector<2x64xf32>
    %387 = arith.divf %385, %386 : vector<2x64xf32>
    %388 = vector.extract_strided_slice %272 {offsets = [0, 128], sizes = [2, 64], strides = [1, 1]} : vector<2x192xf32> to vector<2x64xf32>
    %389 = vector.extract_strided_slice %371 {offsets = [0, 128], sizes = [2, 64], strides = [1, 1]} : vector<2x192xf32> to vector<2x64xf32>
    %390 = vector.broadcast %283 : vector<1x64xf32> to vector<2x64xf32>
    %391 = arith.addf %389, %390 : vector<2x64xf32>
    %392 = arith.mulf %379, %391 : vector<2x64xf32>
    %393 = arith.addf %388, %392 : vector<2x64xf32>
    %394 = math.tanh %393 : vector<2x64xf32>
    %cst_87 = arith.constant 1.000000e+00 : f32
    %395 = vector.broadcast %cst_87 : f32 to vector<2x64xf32>
    %396 = arith.subf %395, %387 : vector<2x64xf32>
    %397 = arith.mulf %396, %394 : vector<2x64xf32>
    %398 = arith.mulf %387, %370 : vector<2x64xf32>
    %399 = arith.addf %397, %398 : vector<2x64xf32>
    %cst_88 = arith.constant dense<0.000000e+00> : vector<2x192xf32>
    %400 = tpu.matmul %399, %282, %cst_88 {dimension_numbers = #tpu.dot_dimension_numbers<[1], [0], [0], [1], [0, 0, 1, 1], [], []>} : vector<2x64xf32>, vector<64x192xf32>, vector<2x192xf32> -> vector<2x192xf32>
    %401 = vector.extract_strided_slice %273 {offsets = [0, 0], sizes = [2, 64], strides = [1, 1]} : vector<2x192xf32> to vector<2x64xf32>
    %402 = vector.extract_strided_slice %400 {offsets = [0, 0], sizes = [2, 64], strides = [1, 1]} : vector<2x192xf32> to vector<2x64xf32>
    %403 = arith.addf %401, %402 : vector<2x64xf32>
    %404 = arith.negf %403 : vector<2x64xf32>
    %405 = math.exp %404 : vector<2x64xf32>
    %cst_89 = arith.constant 1.000000e+00 : f32
    %406 = vector.broadcast %cst_89 : f32 to vector<2x64xf32>
    %407 = arith.addf %406, %405 : vector<2x64xf32>
    %408 = arith.divf %406, %407 : vector<2x64xf32>
    %409 = vector.extract_strided_slice %273 {offsets = [0, 64], sizes = [2, 64], strides = [1, 1]} : vector<2x192xf32> to vector<2x64xf32>
    %410 = vector.extract_strided_slice %400 {offsets = [0, 64], sizes = [2, 64], strides = [1, 1]} : vector<2x192xf32> to vector<2x64xf32>
    %411 = arith.addf %409, %410 : vector<2x64xf32>
    %412 = arith.negf %411 : vector<2x64xf32>
    %413 = math.exp %412 : vector<2x64xf32>
    %cst_90 = arith.constant 1.000000e+00 : f32
    %414 = vector.broadcast %cst_90 : f32 to vector<2x64xf32>
    %415 = arith.addf %414, %413 : vector<2x64xf32>
    %416 = arith.divf %414, %415 : vector<2x64xf32>
    %417 = vector.extract_strided_slice %273 {offsets = [0, 128], sizes = [2, 64], strides = [1, 1]} : vector<2x192xf32> to vector<2x64xf32>
    %418 = vector.extract_strided_slice %400 {offsets = [0, 128], sizes = [2, 64], strides = [1, 1]} : vector<2x192xf32> to vector<2x64xf32>
    %419 = vector.broadcast %283 : vector<1x64xf32> to vector<2x64xf32>
    %420 = arith.addf %418, %419 : vector<2x64xf32>
    %421 = arith.mulf %408, %420 : vector<2x64xf32>
    %422 = arith.addf %417, %421 : vector<2x64xf32>
    %423 = math.tanh %422 : vector<2x64xf32>
    %cst_91 = arith.constant 1.000000e+00 : f32
    %424 = vector.broadcast %cst_91 : f32 to vector<2x64xf32>
    %425 = arith.subf %424, %416 : vector<2x64xf32>
    %426 = arith.mulf %425, %423 : vector<2x64xf32>
    %427 = arith.mulf %416, %399 : vector<2x64xf32>
    %428 = arith.addf %426, %427 : vector<2x64xf32>
    %cst_92 = arith.constant dense<0.000000e+00> : vector<2x192xf32>
    %429 = tpu.matmul %428, %282, %cst_92 {dimension_numbers = #tpu.dot_dimension_numbers<[1], [0], [0], [1], [0, 0, 1, 1], [], []>} : vector<2x64xf32>, vector<64x192xf32>, vector<2x192xf32> -> vector<2x192xf32>
    %430 = vector.extract_strided_slice %274 {offsets = [0, 0], sizes = [2, 64], strides = [1, 1]} : vector<2x192xf32> to vector<2x64xf32>
    %431 = vector.extract_strided_slice %429 {offsets = [0, 0], sizes = [2, 64], strides = [1, 1]} : vector<2x192xf32> to vector<2x64xf32>
    %432 = arith.addf %430, %431 : vector<2x64xf32>
    %433 = arith.negf %432 : vector<2x64xf32>
    %434 = math.exp %433 : vector<2x64xf32>
    %cst_93 = arith.constant 1.000000e+00 : f32
    %435 = vector.broadcast %cst_93 : f32 to vector<2x64xf32>
    %436 = arith.addf %435, %434 : vector<2x64xf32>
    %437 = arith.divf %435, %436 : vector<2x64xf32>
    %438 = vector.extract_strided_slice %274 {offsets = [0, 64], sizes = [2, 64], strides = [1, 1]} : vector<2x192xf32> to vector<2x64xf32>
    %439 = vector.extract_strided_slice %429 {offsets = [0, 64], sizes = [2, 64], strides = [1, 1]} : vector<2x192xf32> to vector<2x64xf32>
    %440 = arith.addf %438, %439 : vector<2x64xf32>
    %441 = arith.negf %440 : vector<2x64xf32>
    %442 = math.exp %441 : vector<2x64xf32>
    %cst_94 = arith.constant 1.000000e+00 : f32
    %443 = vector.broadcast %cst_94 : f32 to vector<2x64xf32>
    %444 = arith.addf %443, %442 : vector<2x64xf32>
    %445 = arith.divf %443, %444 : vector<2x64xf32>
    %446 = vector.extract_strided_slice %274 {offsets = [0, 128], sizes = [2, 64], strides = [1, 1]} : vector<2x192xf32> to vector<2x64xf32>
    %447 = vector.extract_strided_slice %429 {offsets = [0, 128], sizes = [2, 64], strides = [1, 1]} : vector<2x192xf32> to vector<2x64xf32>
    %448 = vector.broadcast %283 : vector<1x64xf32> to vector<2x64xf32>
    %449 = arith.addf %447, %448 : vector<2x64xf32>
    %450 = arith.mulf %437, %449 : vector<2x64xf32>
    %451 = arith.addf %446, %450 : vector<2x64xf32>
    %452 = math.tanh %451 : vector<2x64xf32>
    %cst_95 = arith.constant 1.000000e+00 : f32
    %453 = vector.broadcast %cst_95 : f32 to vector<2x64xf32>
    %454 = arith.subf %453, %445 : vector<2x64xf32>
    %455 = arith.mulf %454, %452 : vector<2x64xf32>
    %456 = arith.mulf %445, %428 : vector<2x64xf32>
    %457 = arith.addf %455, %456 : vector<2x64xf32>
    %cst_96 = arith.constant dense<0.000000e+00> : vector<2x192xf32>
    %458 = tpu.matmul %457, %282, %cst_96 {dimension_numbers = #tpu.dot_dimension_numbers<[1], [0], [0], [1], [0, 0, 1, 1], [], []>} : vector<2x64xf32>, vector<64x192xf32>, vector<2x192xf32> -> vector<2x192xf32>
    %459 = vector.extract_strided_slice %275 {offsets = [0, 0], sizes = [2, 64], strides = [1, 1]} : vector<2x192xf32> to vector<2x64xf32>
    %460 = vector.extract_strided_slice %458 {offsets = [0, 0], sizes = [2, 64], strides = [1, 1]} : vector<2x192xf32> to vector<2x64xf32>
    %461 = arith.addf %459, %460 : vector<2x64xf32>
    %462 = arith.negf %461 : vector<2x64xf32>
    %463 = math.exp %462 : vector<2x64xf32>
    %cst_97 = arith.constant 1.000000e+00 : f32
    %464 = vector.broadcast %cst_97 : f32 to vector<2x64xf32>
    %465 = arith.addf %464, %463 : vector<2x64xf32>
    %466 = arith.divf %464, %465 : vector<2x64xf32>
    %467 = vector.extract_strided_slice %275 {offsets = [0, 64], sizes = [2, 64], strides = [1, 1]} : vector<2x192xf32> to vector<2x64xf32>
    %468 = vector.extract_strided_slice %458 {offsets = [0, 64], sizes = [2, 64], strides = [1, 1]} : vector<2x192xf32> to vector<2x64xf32>
    %469 = arith.addf %467, %468 : vector<2x64xf32>
    %470 = arith.negf %469 : vector<2x64xf32>
    %471 = math.exp %470 : vector<2x64xf32>
    %cst_98 = arith.constant 1.000000e+00 : f32
    %472 = vector.broadcast %cst_98 : f32 to vector<2x64xf32>
    %473 = arith.addf %472, %471 : vector<2x64xf32>
    %474 = arith.divf %472, %473 : vector<2x64xf32>
    %475 = vector.extract_strided_slice %275 {offsets = [0, 128], sizes = [2, 64], strides = [1, 1]} : vector<2x192xf32> to vector<2x64xf32>
    %476 = vector.extract_strided_slice %458 {offsets = [0, 128], sizes = [2, 64], strides = [1, 1]} : vector<2x192xf32> to vector<2x64xf32>
    %477 = vector.broadcast %283 : vector<1x64xf32> to vector<2x64xf32>
    %478 = arith.addf %476, %477 : vector<2x64xf32>
    %479 = arith.mulf %466, %478 : vector<2x64xf32>
    %480 = arith.addf %475, %479 : vector<2x64xf32>
    %481 = math.tanh %480 : vector<2x64xf32>
    %cst_99 = arith.constant 1.000000e+00 : f32
    %482 = vector.broadcast %cst_99 : f32 to vector<2x64xf32>
    %483 = arith.subf %482, %474 : vector<2x64xf32>
    %484 = arith.mulf %483, %481 : vector<2x64xf32>
    %485 = arith.mulf %474, %457 : vector<2x64xf32>
    %486 = arith.addf %484, %485 : vector<2x64xf32>
    %cst_100 = arith.constant dense<0.000000e+00> : vector<2x192xf32>
    %487 = tpu.matmul %486, %282, %cst_100 {dimension_numbers = #tpu.dot_dimension_numbers<[1], [0], [0], [1], [0, 0, 1, 1], [], []>} : vector<2x64xf32>, vector<64x192xf32>, vector<2x192xf32> -> vector<2x192xf32>
    %488 = vector.extract_strided_slice %276 {offsets = [0, 0], sizes = [2, 64], strides = [1, 1]} : vector<2x192xf32> to vector<2x64xf32>
    %489 = vector.extract_strided_slice %487 {offsets = [0, 0], sizes = [2, 64], strides = [1, 1]} : vector<2x192xf32> to vector<2x64xf32>
    %490 = arith.addf %488, %489 : vector<2x64xf32>
    %491 = arith.negf %490 : vector<2x64xf32>
    %492 = math.exp %491 : vector<2x64xf32>
    %cst_101 = arith.constant 1.000000e+00 : f32
    %493 = vector.broadcast %cst_101 : f32 to vector<2x64xf32>
    %494 = arith.addf %493, %492 : vector<2x64xf32>
    %495 = arith.divf %493, %494 : vector<2x64xf32>
    %496 = vector.extract_strided_slice %276 {offsets = [0, 64], sizes = [2, 64], strides = [1, 1]} : vector<2x192xf32> to vector<2x64xf32>
    %497 = vector.extract_strided_slice %487 {offsets = [0, 64], sizes = [2, 64], strides = [1, 1]} : vector<2x192xf32> to vector<2x64xf32>
    %498 = arith.addf %496, %497 : vector<2x64xf32>
    %499 = arith.negf %498 : vector<2x64xf32>
    %500 = math.exp %499 : vector<2x64xf32>
    %cst_102 = arith.constant 1.000000e+00 : f32
    %501 = vector.broadcast %cst_102 : f32 to vector<2x64xf32>
    %502 = arith.addf %501, %500 : vector<2x64xf32>
    %503 = arith.divf %501, %502 : vector<2x64xf32>
    %504 = vector.extract_strided_slice %276 {offsets = [0, 128], sizes = [2, 64], strides = [1, 1]} : vector<2x192xf32> to vector<2x64xf32>
    %505 = vector.extract_strided_slice %487 {offsets = [0, 128], sizes = [2, 64], strides = [1, 1]} : vector<2x192xf32> to vector<2x64xf32>
    %506 = vector.broadcast %283 : vector<1x64xf32> to vector<2x64xf32>
    %507 = arith.addf %505, %506 : vector<2x64xf32>
    %508 = arith.mulf %495, %507 : vector<2x64xf32>
    %509 = arith.addf %504, %508 : vector<2x64xf32>
    %510 = math.tanh %509 : vector<2x64xf32>
    %cst_103 = arith.constant 1.000000e+00 : f32
    %511 = vector.broadcast %cst_103 : f32 to vector<2x64xf32>
    %512 = arith.subf %511, %503 : vector<2x64xf32>
    %513 = arith.mulf %512, %510 : vector<2x64xf32>
    %514 = arith.mulf %503, %486 : vector<2x64xf32>
    %515 = arith.addf %513, %514 : vector<2x64xf32>
    %516 = vector.extract_strided_slice %254 {offsets = [0, 0], sizes = [2, 32], strides = [1, 1]} : vector<2x64xf32> to vector<2x32xf32>
    %c0_104 = arith.constant 0 : index
    %c0_105 = arith.constant 0 : index
    %c0_106 = arith.constant 0 : index
    %517 = vector.load %arg12[%c0_104, %c0_105, %c0_106] : memref<4x2x32xf32, #tpu.memory_space<vmem>>, vector<1x2x32xf32>
    %518 = vector.shape_cast %517 : vector<1x2x32xf32> to vector<2x32xf32>
    %519 = vector.shape_cast %516 : vector<2x32xf32> to vector<1x2x32xf32>
    tpu.vector_store %arg12[%c0_104, %c0_105, %c0_106], %519 {strides = array<i32>} : memref<4x2x32xf32, #tpu.memory_space<vmem>>, vector<1x2x32xf32>,
    %520 = vector.extract_strided_slice %254 {offsets = [0, 32], sizes = [2, 32], strides = [1, 1]} : vector<2x64xf32> to vector<2x32xf32>
    %c1_107 = arith.constant 1 : index
    %c0_108 = arith.constant 0 : index
    %c0_109 = arith.constant 0 : index
    %521 = vector.load %arg12[%c1_107, %c0_108, %c0_109] : memref<4x2x32xf32, #tpu.memory_space<vmem>>, vector<1x2x32xf32>
    %522 = vector.shape_cast %521 : vector<1x2x32xf32> to vector<2x32xf32>
    %523 = vector.shape_cast %520 : vector<2x32xf32> to vector<1x2x32xf32>
    tpu.vector_store %arg12[%c1_107, %c0_108, %c0_109], %523 {strides = array<i32>} : memref<4x2x32xf32, #tpu.memory_space<vmem>>, vector<1x2x32xf32>,
    %524 = vector.extract_strided_slice %515 {offsets = [0, 0], sizes = [2, 32], strides = [1, 1]} : vector<2x64xf32> to vector<2x32xf32>
    %c2_110 = arith.constant 2 : index
    %c0_111 = arith.constant 0 : index
    %c0_112 = arith.constant 0 : index
    %525 = vector.load %arg12[%c2_110, %c0_111, %c0_112] : memref<4x2x32xf32, #tpu.memory_space<vmem>>, vector<1x2x32xf32>
    %526 = vector.shape_cast %525 : vector<1x2x32xf32> to vector<2x32xf32>
    %527 = vector.shape_cast %524 : vector<2x32xf32> to vector<1x2x32xf32>
    tpu.vector_store %arg12[%c2_110, %c0_111, %c0_112], %527 {strides = array<i32>} : memref<4x2x32xf32, #tpu.memory_space<vmem>>, vector<1x2x32xf32>,
    %528 = vector.extract_strided_slice %515 {offsets = [0, 32], sizes = [2, 32], strides = [1, 1]} : vector<2x64xf32> to vector<2x32xf32>
    %c3_113 = arith.constant 3 : index
    %c0_114 = arith.constant 0 : index
    %c0_115 = arith.constant 0 : index
    %529 = vector.load %arg12[%c3_113, %c0_114, %c0_115] : memref<4x2x32xf32, #tpu.memory_space<vmem>>, vector<1x2x32xf32>
    %530 = vector.shape_cast %529 : vector<1x2x32xf32> to vector<2x32xf32>
    %531 = vector.shape_cast %528 : vector<2x32xf32> to vector<1x2x32xf32>
    tpu.vector_store %arg12[%c3_113, %c0_114, %c0_115], %531 {strides = array<i32>} : memref<4x2x32xf32, #tpu.memory_space<vmem>>, vector<1x2x32xf32>,
    %532 = tpu.concatenate %312, %515 in 1 : vector<2x64xf32>, vector<2x64xf32> -> vector<2x128xf32>
    %c0_116 = arith.constant 0 : index
    %c0_117 = arith.constant 0 : index
    %533 = vector.load %arg9[%c0_116, %c0_117] : memref<128x2xf32, #tpu.memory_space<vmem>>, vector<128x2xf32>
    %cst_118 = arith.constant dense<0.000000e+00> : vector<2x2xf32>
    %534 = tpu.matmul %532, %533, %cst_118 {dimension_numbers = #tpu.dot_dimension_numbers<[1], [0], [0], [1], [0, 0, 1, 1], [], []>} : vector<2x128xf32>, vector<128x2xf32>, vector<2x2xf32> -> vector<2x2xf32>
    %c0_119 = arith.constant 0 : index
    %c0_120 = arith.constant 0 : index
    %535 = vector.load %arg10[%c0_119, %c0_120] : memref<1x2xf32, #tpu.memory_space<vmem>>, vector<1x2xf32>
    %536 = vector.broadcast %535 : vector<1x2xf32> to vector<2x2xf32>
    %537 = arith.addf %534, %536 : vector<2x2xf32>
    %c0_121 = arith.constant 0 : index
    %c0_122 = arith.constant 0 : index
    %538 = vector.load %arg11[%c0_121, %c0_122] : memref<2x2xf32, #tpu.memory_space<vmem>>, vector<2x2xf32>
    tpu.vector_store %arg11[%c0_121, %c0_122], %537 {strides = array<i32>} : memref<2x2xf32, #tpu.memory_space<vmem>>, vector<2x2xf32>,
    return
  }
  func.func @transform_0(%arg0: i32) -> (i32, i32, i32) {
    %c0_i32 = arith.constant 0 : i32
    %c0_i32_0 = arith.constant 0 : i32
    %c0_i32_1 = arith.constant 0 : i32
    %c0_i32_2 = arith.constant 0 : i32
    return %c0_i32, %c0_i32_0, %c0_i32_1 : i32, i32, i32
  }
  func.func @transform_1(%arg0: i32) -> (i32, i32, i32) {
    %c0_i32 = arith.constant 0 : i32
    %c0_i32_0 = arith.constant 0 : i32
    %c0_i32_1 = arith.constant 0 : i32
    %c0_i32_2 = arith.constant 0 : i32
    return %c0_i32, %c0_i32_0, %c0_i32_1 : i32, i32, i32
  }
  func.func @transform_2(%arg0: i32) -> (i32, i32) {
    %c0_i32 = arith.constant 0 : i32
    %c0_i32_0 = arith.constant 0 : i32
    %c0_i32_1 = arith.constant 0 : i32
    return %c0_i32, %c0_i32_0 : i32, i32
  }
  func.func @transform_3(%arg0: i32) -> (i32, i32) {
    %c0_i32 = arith.constant 0 : i32
    %c0_i32_0 = arith.constant 0 : i32
    %c0_i32_1 = arith.constant 0 : i32
    return %c0_i32, %c0_i32_0 : i32, i32
  }
  func.func @transform_4(%arg0: i32) -> (i32, i32) {
    %c0_i32 = arith.constant 0 : i32
    %c0_i32_0 = arith.constant 0 : i32
    %c0_i32_1 = arith.constant 0 : i32
    return %c0_i32, %c0_i32_0 : i32, i32
  }
  func.func @transform_5(%arg0: i32) -> (i32, i32) {
    %c0_i32 = arith.constant 0 : i32
    %c0_i32_0 = arith.constant 0 : i32
    %c0_i32_1 = arith.constant 0 : i32
    return %c0_i32, %c0_i32_0 : i32, i32
  }
  func.func @transform_6(%arg0: i32) -> (i32, i32) {
    %c0_i32 = arith.constant 0 : i32
    %c0_i32_0 = arith.constant 0 : i32
    %c0_i32_1 = arith.constant 0 : i32
    return %c0_i32, %c0_i32_0 : i32, i32
  }
  func.func @transform_7(%arg0: i32) -> (i32, i32) {
    %c0_i32 = arith.constant 0 : i32
    %c0_i32_0 = arith.constant 0 : i32
    %c0_i32_1 = arith.constant 0 : i32
    return %c0_i32, %c0_i32_0 : i32, i32
  }
  func.func @transform_8(%arg0: i32) -> (i32, i32) {
    %c0_i32 = arith.constant 0 : i32
    %c0_i32_0 = arith.constant 0 : i32
    %c0_i32_1 = arith.constant 0 : i32
    return %c0_i32, %c0_i32_0 : i32, i32
  }
  func.func @transform_9(%arg0: i32) -> (i32, i32) {
    %c0_i32 = arith.constant 0 : i32
    %c0_i32_0 = arith.constant 0 : i32
    %c0_i32_1 = arith.constant 0 : i32
    return %c0_i32, %c0_i32_0 : i32, i32
  }
  func.func @transform_10(%arg0: i32) -> (i32, i32) {
    %c0_i32 = arith.constant 0 : i32
    %c0_i32_0 = arith.constant 0 : i32
    %c0_i32_1 = arith.constant 0 : i32
    return %c0_i32, %c0_i32_0 : i32, i32
  }
  func.func @transform_11(%arg0: i32) -> (i32, i32, i32) {
    %c0_i32 = arith.constant 0 : i32
    %c0_i32_0 = arith.constant 0 : i32
    %c0_i32_1 = arith.constant 0 : i32
    %c0_i32_2 = arith.constant 0 : i32
    return %c0_i32, %c0_i32_0, %c0_i32_1 : i32, i32, i32
  }
}

</mosaic_0001>

<bundles_post_ra>
// kernel: rnn_forward.1
= control target key start
LH: loop header
LB: loop body
LE: loop exit
PB: predicated region body
PF: predicated region fallthrough
CT: control target
= control target key end

     0   :  { %17 = vsyncpa [#allocation3], 0  ;;  %s2659_s23 = smov 32   ;;  %v2660_v11 = vmov 0.0   ;;  %s3439_s0 = inlined_call_operand.vmem [shape: f32[8,2,192], index: 0, kind: input, shape index: {}]   ;;  %s3440_s1 = inlined_call_operand.vmem [shape: f32[4,2,32], index: 1, kind: input, shape index: {}]   ;;  %s3441_s2 = inlined_call_operand.vmem [shape: f32[64,192], index: 2, kind: input, shape index: {}]   ;;  %s3442_s3 = inlined_call_operand.vmem [shape: f32[1,64], index: 3, kind: input, shape index: {}]   ;;  %s3443_s4 = inlined_call_operand.vmem [shape: f32[128,192], index: 4, kind: input, shape index: {}]   ;;  %s3444_s5 = inlined_call_operand.vmem [shape: f32[1,192], index: 5, kind: input, shape index: {}]   ;;  %s3445_s6 = inlined_call_operand.vmem [shape: f32[64,192], index: 6, kind: input, shape index: {}]   ;;  %s3446_s7 = inlined_call_operand.vmem [shape: f32[1,64], index: 7, kind: input, shape index: {}]   ;;  %s3447_s8 = inlined_call_operand.vmem [shape: f32[128,2], index: 8, kind: input, shape index: {}]   ;;  %s3448_s9 = inlined_call_operand.vmem [shape: f32[1,2], index: 9, kind: input, shape index: {}]   ;;  %s3449_s10 = inlined_call_operand.hbm [shape: f32[2,2], index: 10, kind: output, shape index: {0}]   ;;  %s3450_s11 = inlined_call_operand.hbm [shape: f32[4,2,32], index: 11, kind: output, shape index: {1}]  }
   0x1   :  { %v2097_v0 = vld [vmem:[%s3440_s1 + $0x2] sm:$0x3]  ;;  %v64_v1 = vld [vmem:[%s3441_s2 + $0x8] sm:$0xff]  ;;  %v66_v2 = vld [vmem:[%s3441_s2 + $0x18] sm:$0xff]  ;;  %148 = vmatprep.mubr.f32.mxu1 %v2660_v11  ;;  %374 = vmatprep.mubr.f32.mxu0 %v2660_v11 }
   0x2   :  { %43 = vrot.lane.b32.xlu0 %v2097_v0, %s2659_s23  ;;  %v2738_v3 = vpack.c.bf16 %v66_v2, %v64_v1  ;;  %v63_v4 = vld [vmem:[%s3441_s2] sm:$0xff]  ;;  %v65_v5 = vld [vmem:[%s3441_s2 + $0x10] sm:$0xff]  ;;  %v68_v6 = vld [vmem:[%s3441_s2 + $0x28] sm:$0xff] }
   0x3   :  { %v2749_v7 = vpack.c.bf16 %v65_v5, %v63_v4  ;;  %v70_v8 = vld [vmem:[%s3441_s2 + $0x38] sm:$0xff]  ;;  %v67_v9 = vld [vmem:[%s3441_s2 + $0x20] sm:$0xff]  ;;  %v69_v10 = vld [vmem:[%s3441_s2 + $0x30] sm:$0xff] }
   0x4   :  { %2195 = vmatprep.subr.bf16.mxu1 %v2738_v3  ;;  %v2763_v12 = vpack.c.bf16 %v70_v8, %v68_v6  ;;  %v72_v13 = vld [vmem:[%s3441_s2 + $0x48] sm:$0xff]  ;;  %v74_v14 = vld [vmem:[%s3441_s2 + $0x58] sm:$0xff]  ;;  %2227 = vmatprep.subr.bf16.mxu0 %v2738_v3  ;;  %v2773_v15 = vpack.c.bf16 %v69_v10, %v67_v9  ;;  %v71_v17 = vld [vmem:[%s3441_s2 + $0x40] sm:$0xff] }
   0x5   :  { %2197 = vmatpush1.bf16.msra.mxu1 %v2749_v7  ;;  %2229 = vmatpush1.bf16.msra.mxu0 %v2749_v7  ;;  %v2777_v16 = vpack.c.bf16 %v74_v14, %v72_v13  ;;  %v73_v18 = vld [vmem:[%s3441_s2 + $0x50] sm:$0xff]  ;;  %v76_v19 = vld [vmem:[%s3441_s2 + $0x68] sm:$0xff]  ;;  %v78_v20 = vld [vmem:[%s3441_s2 + $0x78] sm:$0xff] }
   0x6   :  { %2199 = vmatprep.subr.bf16.mxu1 %v2763_v12  ;;  %2231 = vmatprep.subr.bf16.mxu0 %v2763_v12 }
   0x7   :  { %18 = vsyncpa [#allocation5], 0  ;;  %v2793_v21 = vpack.c.bf16 %v73_v18, %v71_v17  ;;  %v2797_v22 = vpack.c.bf16 %v78_v20, %v76_v19  ;;  %v75_v23 = vld [vmem:[%s3441_s2 + $0x60] sm:$0xff]  ;;  %v77_v24 = vld [vmem:[%s3441_s2 + $0x70] sm:$0xff]  ;;  %v2661_v26 = vmov 1983009808   ;;  %v184_v28 = vlaneseq }
   0x8   :  { %v2807_v25 = vpack.c.bf16 %v77_v24, %v75_v23  ;;  %v182_v27 = vunpack.c.l.s4 %v2661_v26  ;;  %vm46_vm0 = vcmask 261120   ;;  %v39_v31 = vld [vmem:[%s3440_s1] sm:$0x3]  ;;  %vm80_vm1 = vcmask 523264   ;;  %s2662_s16 = smov 64  }
   0x9   :  { %2201 = vmatpush1.bf16.msra.mxu1 %v2773_v15  ;;  %2233 = vmatpush1.bf16.msra.mxu0 %v2773_v15  ;;  %v2816_v30 = vshrl.u32 %v184_v28, 7  ;;  %v48_v36 = vld [vmem:[%s3439_s0] sm:$0xf]  ;;  %v2098_v58 = vld [vmem:[%s3439_s0 + $0x4] sm:$0xf]  ;;  %vm972_vm2 = vcmask 1041408  }
   0xa   :  { %2203 = vmatprep.subr.bf16.mxu1 %v2777_v16  ;;  %2235 = vmatprep.subr.bf16.mxu0 %v2777_v16  ;;  %v183_v29 = vunpack.c.0.s8 %v182_v27  ;;  %v2843_v43 = vld [vmem:[%s3442_s3] ss:$0 sm:$0xff]  ;;  %v171_v44 = vrot.slane %v48_v36, 2  ;;  %v286_v1 = vrot.slane %v2098_v58, 2  ;;  %v2099_v20 = vld [vmem:[%s3439_s0 + $0x8] sm:$0xf] }
   0xb   :  { %vm976_vm3 = vcmask 1045504   ;;  %vm974_vm4 = vcmask 1043456   ;;  %vm1949_vm5 = vcmask 254976   ;;  %vm2664_vm6 = vmmov 0  }
   0xc   :  { %v2822_v32 = vsub.s32 %v183_v29, %v2816_v30  ;;  %vm1961_vm7 = vcmask 261126  }
   0xd   :  { %2205 = vmatpush1.bf16.msra.mxu1 %v2793_v21  ;;  %2237 = vmatpush1.bf16.msra.mxu0 %v2793_v21 }
   0xe   :  { %2207 = vmatprep.subr.bf16.mxu1 %v2797_v22  ;;  %2239 = vmatprep.subr.bf16.mxu0 %v2797_v22 }
  0x11   :  { %2209 = vmatpush1.bf16.msra.mxu1 %v2807_v25  ;;  %2241 = vmatpush1.bf16.msra.mxu0 %v2807_v25 }
  0x12   :  { %2211 = vmatprep.subr.bf16.mxu1 %v2738_v3  ;;  %2259 = vmatprep.subr.bf16.mxu0 %v2738_v3 }
  0x74   :  { %v44_v33 = vpop.permute.xlu0 %43 }
  0x75   :  { %v47_v34 = vsel %vm46_vm0, %v39_v31, %v44_v33  ;;  %v391_v31 = vrot.slane %v2099_v20, 2 }
  0x76   :  { %2105 = vmatmul.mubr.msk.f32.vlgmr.msra.gmra.mrb[0].mxu1 %vm80_vm1, %v47_v34  ;;  %v187_v35 = vrot.slane %v47_v34, %v2822_v32 }
  0x77   :  { %2213 = vmatpush1.bf16.msra.mxu1 %v2749_v7  ;;  %269 = vmatprep.mubr.f32.mxu1 %v2660_v11 }
  0x78   :  { %188 = vrot.lane.b32.xlu1 %v187_v35, %s2662_s16  ;;  %2215 = vmatprep.subr.bf16.mxu1 %v2763_v12 }
  0x7b   :  { %2217 = vmatpush1.bf16.msra.mxu1 %v2773_v15 }
  0x7c   :  { %2219 = vmatprep.subr.bf16.mxu1 %v2777_v16 }
  0x7f   :  { %2221 = vmatpush1.bf16.msra.mxu1 %v2793_v21 }
  0x80   :  { %2223 = vmatprep.subr.bf16.mxu1 %v2797_v22 }
  0x83   :  { %2225 = vmatpush1.bf16.msra.mxu1 %v2807_v25 }
  0x84   :  { %2243 = vmatprep.subr.bf16.mxu1 %v2738_v3 }
  0xea   :  { %v189_v51 = vpop.permute.xlu1 %188 }
 0x149   :  { %v150_v37 = vpop.f32.mrb[0].mxu1 }
 0x14a   :  { %v155_v38 = vadd.f32 %v150_v37, %v48_v36  ;;  %v152_v39 = vpop.f32.mrb[1].mxu1 }
 0x14b   :  { %v168_v45 = vadd.f32 %v2843_v43, %v152_v39 }
 0x14c   :  { %v2106_v40 = vmul.f32 -1.442695, %v155_v38 }
 0x14e   :  { %2515 = vpow2.f32 %v2106_v40 }
 0x158   :  { %v2516_v41 = vpop.eup %2515 }
 0x159   :  { %v159_v42 = vadd.f32 1.0, %v2516_v41 }
 0x15b   :  { %2517 = vrcp.f32 %v159_v42 }
 0x165   :  { %v2518_v46 = vpop.eup %2517 }
 0x166   :  { %v169_v47 = vmul.f32 %v2518_v46, %v168_v45  ;;  %v175_v50 = vsub.f32 1.0, %v2518_v46  ;;  %v191_v53 = vmul.f32 %v2518_v46, %v189_v51  ;;  %v2100_v46 = vld [vmem:[%s3439_s0 + $0xc] sm:$0xf] }
 0x168   :  { %v173_v48 = vadd.f32 %v171_v44, %v169_v47 }
 0x16a   :  { %2519 = vtanh.f32 %v173_v48 }
 0x174   :  { %v2520_v49 = vpop.eup %2519 }
 0x175   :  { %177 = vrot.lane.b32.xlu0 %v2520_v49, %s2662_s16 }
 0x1e7   :  { %v178_v52 = vpop.permute.xlu0 %177 }
 0x1e8   :  { %v180_v54 = vmul.f32 %v178_v52, %v175_v50 }
 0x1ea   :  { %v2847_v55 = vadd.f32 %v191_v53, %v180_v54  ;;  %v496_v53 = vrot.slane %v2100_v46, 2 }
 0x1ec   :  { %v200_v56 = vrot.slane %v2847_v55, %v2822_v32 }
 0x1ee   :  { %201 = vrot.lane.b32.xlu1 %v200_v56, %s2662_s16 }
 0x260   :  { %v2852_v57 = vpop.permute.xlu1 %201 }
 0x261   :  { %2108 = vmatmul.mubr.msk.f32.vlgmr.msra.gmra.mrb[2].mxu1 %vm80_vm1, %v2852_v57 }
 0x262   :  { %2245 = vmatpush1.bf16.msra.mxu1 %v2749_v7  ;;  %479 = vmatprep.mubr.f32.mxu1 %v2660_v11 }
 0x263   :  { %2247 = vmatprep.subr.bf16.mxu1 %v2763_v12 }
 0x266   :  { %2249 = vmatpush1.bf16.msra.mxu1 %v2773_v15 }
 0x267   :  { %2251 = vmatprep.subr.bf16.mxu1 %v2777_v16 }
 0x26a   :  { %2253 = vmatpush1.bf16.msra.mxu1 %v2793_v21 }
 0x26b   :  { %2255 = vmatprep.subr.bf16.mxu1 %v2797_v22 }
 0x26e   :  { %2257 = vmatpush1.bf16.msra.mxu1 %v2807_v25 }
 0x26f   :  { %2275 = vmatprep.subr.bf16.mxu1 %v2738_v3 }
 0x334   :  { %v271_v59 = vpop.f32.mrb[2].mxu1 }
 0x335   :  { %v276_v60 = vadd.f32 %v2098_v58, %v271_v59  ;;  %v273_v61 = vpop.f32.mrb[3].mxu1 }
 0x336   :  { %v283_v2 = vadd.f32 %v2843_v43, %v273_v61 }
 0x337   :  { %v2109_v62 = vmul.f32 -1.442695, %v276_v60 }
 0x339   :  { %2521 = vpow2.f32 %v2109_v62 }
 0x343   :  { %v2522_v63 = vpop.eup %2521 }
 0x344   :  { %v280_v0 = vadd.f32 1.0, %v2522_v63 }
 0x346   :  { %2523 = vrcp.f32 %v280_v0 }
 0x350   :  { %v2524_v4 = vpop.eup %2523 }
 0x351   :  { %v284_v5 = vmul.f32 %v2524_v4, %v283_v2  ;;  %v290_v9 = vsub.f32 1.0, %v2524_v4  ;;  %v296_v13 = vmul.f32 %v2524_v4, %v2847_v55  ;;  %v2101_v4 = vld [vmem:[%s3439_s0 + $0x10] sm:$0xf] }
 0x353   :  { %v288_v6 = vadd.f32 %v286_v1, %v284_v5 }
 0x355   :  { %2525 = vtanh.f32 %v288_v6 }
 0x35f   :  { %v2526_v8 = vpop.eup %2525 }
 0x360   :  { %292 = vrot.lane.b32.xlu0 %v2526_v8, %s2662_s16 }
 0x3d2   :  { %v293_v10 = vpop.permute.xlu0 %292 }
 0x3d3   :  { %v295_v14 = vmul.f32 %v293_v10, %v290_v9 }
 0x3d5   :  { %v2871_v17 = vadd.f32 %v296_v13, %v295_v14  ;;  %v601_v14 = vrot.slane %v2101_v4, 2 }
 0x3d7   :  { %v305_v18 = vrot.slane %v2871_v17, %v2822_v32 }
 0x3d9   :  { %306 = vrot.lane.b32.xlu1 %v305_v18, %s2662_s16 }
 0x44b   :  { %v2876_v19 = vpop.permute.xlu1 %306 }
 0x44c   :  { %2110 = vmatmul.mubr.msk.f32.vlgmr.msra.gmra.mrb[0].mxu0 %vm80_vm1, %v2876_v19 }
 0x44d   :  { %2261 = vmatpush1.bf16.msra.mxu0 %v2749_v7  ;;  %584 = vmatprep.mubr.f32.mxu0 %v2660_v11 }
 0x44e   :  { %2263 = vmatprep.subr.bf16.mxu0 %v2763_v12 }
 0x451   :  { %2265 = vmatpush1.bf16.msra.mxu0 %v2773_v15 }
 0x452   :  { %2267 = vmatprep.subr.bf16.mxu0 %v2777_v16 }
 0x455   :  { %2269 = vmatpush1.bf16.msra.mxu0 %v2793_v21 }
 0x456   :  { %2271 = vmatprep.subr.bf16.mxu0 %v2797_v22 }
 0x459   :  { %2273 = vmatpush1.bf16.msra.mxu0 %v2807_v25 }
 0x45a   :  { %2291 = vmatprep.subr.bf16.mxu0 %v2738_v3 }
 0x51f   :  { %v376_v23 = vpop.f32.mrb[0].mxu0 }
 0x520   :  { %v381_v24 = vadd.f32 %v2099_v20, %v376_v23  ;;  %v378_v26 = vpop.f32.mrb[1].mxu0 }
 0x521   :  { %v388_v33 = vadd.f32 %v2843_v43, %v378_v26 }
 0x522   :  { %v2111_v27 = vmul.f32 -1.442695, %v381_v24 }
 0x524   :  { %2527 = vpow2.f32 %v2111_v27 }
 0x52e   :  { %v2528_v28 = vpop.eup %2527 }
 0x52f   :  { %v385_v29 = vadd.f32 1.0, %v2528_v28 }
 0x531   :  { %2529 = vrcp.f32 %v385_v29 }
 0x53b   :  { %v2530_v34 = vpop.eup %2529 }
 0x53c   :  { %v389_v35 = vmul.f32 %v2530_v34, %v388_v33  ;;  %v395_v38 = vsub.f32 1.0, %v2530_v34  ;;  %v401_v40 = vmul.f32 %v2530_v34, %v2871_v17 }
 0x53e   :  { %v393_v36 = vadd.f32 %v391_v31, %v389_v35 }
 0x540   :  { %2531 = vtanh.f32 %v393_v36  ;;  %v2102_v36 = vld [vmem:[%s3439_s0 + $0x14] sm:$0xf] }
 0x54a   :  { %v2532_v37 = vpop.eup %2531 }
 0x54b   :  { %397 = vrot.lane.b32.xlu0 %v2532_v37, %s2662_s16 }
 0x5bd   :  { %v398_v39 = vpop.permute.xlu0 %397 }
 0x5be   :  { %v400_v41 = vmul.f32 %v398_v39, %v395_v38 }
 0x5c0   :  { %v2895_v42 = vadd.f32 %v401_v40, %v400_v41 }
 0x5c2   :  { %v410_v44 = vrot.slane %v2895_v42, %v2822_v32 }
 0x5c4   :  { %411 = vrot.lane.b32.xlu1 %v410_v44, %s2662_s16 }
 0x636   :  { %v2900_v45 = vpop.permute.xlu1 %411 }
 0x637   :  { %2112 = vmatmul.mubr.msk.f32.vlgmr.msra.gmra.mrb[4].mxu1 %vm80_vm1, %v2900_v45 }
 0x638   :  { %2277 = vmatpush1.bf16.msra.mxu1 %v2749_v7  ;;  %689 = vmatprep.mubr.f32.mxu1 %v2660_v11 }
 0x639   :  { %2279 = vmatprep.subr.bf16.mxu1 %v2763_v12 }
 0x63c   :  { %2281 = vmatpush1.bf16.msra.mxu1 %v2773_v15 }
 0x63d   :  { %2283 = vmatprep.subr.bf16.mxu1 %v2777_v16 }
 0x640   :  { %2285 = vmatpush1.bf16.msra.mxu1 %v2793_v21 }
 0x641   :  { %2287 = vmatprep.subr.bf16.mxu1 %v2797_v22 }
 0x644   :  { %2289 = vmatpush1.bf16.msra.mxu1 %v2807_v25 }
 0x645   :  { %2307 = vmatprep.subr.bf16.mxu1 %v2738_v3 }
 0x70a   :  { %v481_v47 = vpop.f32.mrb[4].mxu1 }
 0x70b   :  { %v486_v48 = vadd.f32 %v2100_v46, %v481_v47  ;;  %v483_v49 = vpop.f32.mrb[5].mxu1 }
 0x70c   :  { %v493_v54 = vadd.f32 %v2843_v43, %v483_v49 }
 0x70d   :  { %v2113_v50 = vmul.f32 -1.442695, %v486_v48 }
 0x70f   :  { %2533 = vpow2.f32 %v2113_v50 }
 0x719   :  { %v2534_v51 = vpop.eup %2533 }
 0x71a   :  { %v490_v52 = vadd.f32 1.0, %v2534_v51 }
 0x71c   :  { %2535 = vrcp.f32 %v490_v52  ;;  %v2103_v52 = vld [vmem:[%s3439_s0 + $0x18] sm:$0xf] }
 0x726   :  { %v2536_v56 = vpop.eup %2535 }
 0x727   :  { %v494_v58 = vmul.f32 %v2536_v56, %v493_v54  ;;  %v500_v60 = vsub.f32 1.0, %v2536_v56  ;;  %v506_v62 = vmul.f32 %v2536_v56, %v2895_v42 }
 0x729   :  { %v498_v59 = vadd.f32 %v496_v53, %v494_v58 }
 0x72b   :  { %2537 = vtanh.f32 %v498_v59 }
 0x735   :  { %v2538_v3 = vpop.eup %2537 }
 0x736   :  { %502 = vrot.lane.b32.xlu0 %v2538_v3, %s2662_s16 }
 0x7a8   :  { %v503_v61 = vpop.permute.xlu0 %502 }
 0x7a9   :  { %v505_v63 = vmul.f32 %v503_v61, %v500_v60  ;;  %v811_v60 = vrot.slane %v2103_v52, 2 }
 0x7ab   :  { %v2919_v0 = vadd.f32 %v506_v62, %v505_v63 }
 0x7ad   :  { %v515_v1 = vrot.slane %v2919_v0, %v2822_v32 }
 0x7af   :  { %516 = vrot.lane.b32.xlu1 %v515_v1, %s2662_s16 }
 0x821   :  { %v2924_v2 = vpop.permute.xlu1 %516 }
 0x822   :  { %2114 = vmatmul.mubr.msk.f32.vlgmr.msra.gmra.mrb[2].mxu0 %vm80_vm1, %v2924_v2 }
 0x823   :  { %2293 = vmatpush1.bf16.msra.mxu0 %v2749_v7  ;;  %794 = vmatprep.mubr.f32.mxu0 %v2660_v11 }
 0x824   :  { %2295 = vmatprep.subr.bf16.mxu0 %v2763_v12 }
 0x827   :  { %2297 = vmatpush1.bf16.msra.mxu0 %v2773_v15 }
 0x828   :  { %2299 = vmatprep.subr.bf16.mxu0 %v2777_v16 }
 0x82b   :  { %2301 = vmatpush1.bf16.msra.mxu0 %v2793_v21 }
 0x82c   :  { %2303 = vmatprep.subr.bf16.mxu0 %v2797_v22 }
 0x82f   :  { %2305 = vmatpush1.bf16.msra.mxu0 %v2807_v25 }
 0x8f5   :  { %v586_v5 = vpop.f32.mrb[2].mxu0 }
 0x8f6   :  { %v591_v6 = vadd.f32 %v2101_v4, %v586_v5  ;;  %v588_v8 = vpop.f32.mrb[3].mxu0 }
 0x8f7   :  { %v598_v18 = vadd.f32 %v2843_v43, %v588_v8 }
 0x8f8   :  { %v2115_v9 = vmul.f32 -1.442695, %v591_v6 }
 0x8fa   :  { %2539 = vpow2.f32 %v2115_v9 }
 0x904   :  { %v2540_v10 = vpop.eup %2539 }
 0x905   :  { %v595_v13 = vadd.f32 1.0, %v2540_v10 }
 0x907   :  { %2541 = vrcp.f32 %v595_v13 }
 0x911   :  { %v2542_v20 = vpop.eup %2541 }
 0x912   :  { %v599_v23 = vmul.f32 %v2542_v20, %v598_v18  ;;  %v605_v27 = vsub.f32 1.0, %v2542_v20  ;;  %v611_v29 = vmul.f32 %v2542_v20, %v2919_v0  ;;  %v2123_v18 = vld [vmem:[%s3440_s1 + $0x6] sm:$0x3]  ;;  %v982_v20 = vld [vmem:[%s3443_s4 + $0x8] sm:$0xff] }
 0x914   :  { %v603_v24 = vadd.f32 %v601_v14, %v599_v23  ;;  %v984_v23 = vld [vmem:[%s3443_s4 + $0x18] sm:$0xff] }
 0x916   :  { %2543 = vtanh.f32 %v603_v24  ;;  %v2322_v24 = vpack.c.bf16 %v984_v23, %v982_v20  ;;  %v1003_v20 = vld [vmem:[%s3443_s4 + $0xb0] sm:$0xff] }
 0x918   :  { %2323 = vmatprep.subr.bf16.mxu0 %v2322_v24  ;;  %v2104_v24 = vld [vmem:[%s3439_s0 + $0x1c] sm:$0xf] }
 0x920   :  { %v2544_v26 = vpop.eup %2543 }
 0x921   :  { %607 = vrot.lane.b32.xlu0 %v2544_v26, %s2662_s16  ;;  %v981_v26 = vld [vmem:[%s3443_s4] sm:$0xff] }
 0x993   :  { %v608_v28 = vpop.permute.xlu0 %607 }
 0x994   :  { %v610_v31 = vmul.f32 %v608_v28, %v605_v27  ;;  %v983_v27 = vld [vmem:[%s3443_s4 + $0x10] sm:$0xff]  ;;  %v986_v28 = vld [vmem:[%s3443_s4 + $0x28] sm:$0xff] }
 0x996   :  { %v2942_v33 = vadd.f32 %v611_v29, %v610_v31  ;;  %v2324_v29 = vpack.c.bf16 %v983_v27, %v981_v26  ;;  %v988_v31 = vld [vmem:[%s3443_s4 + $0x38] sm:$0xff] }
 0x998   :  { %v620_v34 = vrot.slane %v2942_v33, %v2822_v32 }
 0x99a   :  { %621 = vrot.lane.b32.xlu1 %v620_v34, %s2662_s16  ;;  %v985_v34 = vld [vmem:[%s3443_s4 + $0x20] sm:$0xff] }
 0xa0c   :  { %v2947_v35 = vpop.permute.xlu1 %621 }
 0xa0d   :  { %2116 = vmatmul.mubr.msk.f32.vlgmr.msra.gmra.mrb[6].mxu1 %vm80_vm1, %v2947_v35 }
 0xa0e   :  { %2309 = vmatpush1.bf16.msra.mxu1 %v2749_v7  ;;  %899 = vmatprep.mubr.f32.mxu1 %v2660_v11 }
 0xa0f   :  { %2311 = vmatprep.subr.bf16.mxu1 %v2763_v12 }
 0xa12   :  { %2313 = vmatpush1.bf16.msra.mxu1 %v2773_v15  ;;  %v706_v15 = vrot.slane %v2102_v36, 2 }
 0xa13   :  { %2315 = vmatprep.subr.bf16.mxu1 %v2777_v16 }
 0xa16   :  { %2317 = vmatpush1.bf16.msra.mxu1 %v2793_v21 }
 0xa17   :  { %2319 = vmatprep.subr.bf16.mxu1 %v2797_v22 }
 0xa1a   :  { %2321 = vmatpush1.bf16.msra.mxu1 %v2807_v25 }
 0xae0   :  { %v691_v37 = vpop.f32.mrb[6].mxu1 }
 0xae1   :  { %v696_v7 = vadd.f32 %v2102_v36, %v691_v37  ;;  %v693_v38 = vpop.f32.mrb[7].mxu1  ;;  %v987_v36 = vld [vmem:[%s3443_s4 + $0x30] sm:$0xff]  ;;  %v2326_v37 = vpack.c.bf16 %v988_v31, %v986_v28 }
 0xae2   :  { %v703_v16 = vadd.f32 %v2843_v43, %v693_v38  ;;  %v992_v38 = vld [vmem:[%s3443_s4 + $0x58] sm:$0xff] }
 0xae3   :  { %v2117_v39 = vmul.f32 -1.442695, %v696_v7  ;;  %v990_v7 = vld [vmem:[%s3443_s4 + $0x48] sm:$0xff] }
 0xae5   :  { %2545 = vpow2.f32 %v2117_v39  ;;  %v2328_v39 = vpack.c.bf16 %v987_v36, %v985_v34  ;;  %v916_v36 = vrot.slane %v2104_v24, 2 }
 0xaef   :  { %v2546_v12 = vpop.eup %2545 }
 0xaf0   :  { %v700_v40 = vadd.f32 1.0, %v2546_v12  ;;  %v2330_v12 = vpack.c.bf16 %v992_v38, %v990_v7  ;;  %v1006_v38 = vld [vmem:[%s3443_s4 + $0xc8] sm:$0xff] }
 0xaf2   :  { %2547 = vrcp.f32 %v700_v40  ;;  %v989_v40 = vld [vmem:[%s3443_s4 + $0x40] sm:$0xff] }
 0xafc   :  { %v2548_v21 = vpop.eup %2547 }
 0xafd   :  { %v704_v41 = vmul.f32 %v2548_v21, %v703_v16  ;;  %v710_v44 = vsub.f32 1.0, %v2548_v21  ;;  %v716_v47 = vmul.f32 %v2548_v21, %v2942_v33  ;;  %v994_v16 = vld [vmem:[%s3443_s4 + $0x68] sm:$0xff]  ;;  %v996_v21 = vld [vmem:[%s3443_s4 + $0x78] sm:$0xff] }
 0xaff   :  { %v708_v22 = vadd.f32 %v706_v15, %v704_v41  ;;  %v991_v15 = vld [vmem:[%s3443_s4 + $0x50] sm:$0xff]  ;;  %v1112_v41 = vld [vmem:[%s3445_s6 + $0x8] sm:$0xff] }
 0xb01   :  { %2549 = vtanh.f32 %v708_v22  ;;  %v1114_v22 = vld [vmem:[%s3445_s6 + $0x18] sm:$0xff] }
 0xb0b   :  { %v2550_v25 = vpop.eup %2549 }
 0xb0c   :  { %712 = vrot.lane.b32.xlu0 %v2550_v25, %s2662_s16  ;;  %v1111_v25 = vld [vmem:[%s3445_s6] sm:$0xff] }
 0xb7e   :  { %v713_v46 = vpop.permute.xlu0 %712 }
 0xb7f   :  { %v715_v48 = vmul.f32 %v713_v46, %v710_v44  ;;  %v2332_v44 = vpack.c.bf16 %v991_v15, %v989_v40  ;;  %v993_v46 = vld [vmem:[%s3443_s4 + $0x60] sm:$0xff] }
 0xb80   :  { %v1005_v15 = vld [vmem:[%s3443_s4 + $0xc0] sm:$0xff] }
 0xb81   :  { %v2965_v49 = vadd.f32 %v716_v47, %v715_v48  ;;  %v995_v47 = vld [vmem:[%s3443_s4 + $0x70] sm:$0xff]  ;;  %v3052_v48 = vpack.c.bf16 %v1114_v22, %v1112_v41  ;;  %v1122_v41 = vld [vmem:[%s3445_s6 + $0x58] sm:$0xff]  ;;  %v1119_v22 = vld [vmem:[%s3445_s6 + $0x40] sm:$0xff] }
 0xb83   :  { %v725_v50 = vrot.slane %v2965_v49, %v2822_v32  ;;  %2355 = vmatprep.subr.bf16.mxu1 %v3052_v48 }
 0xb85   :  { %726 = vrot.lane.b32.xlu1 %v725_v50, %s2662_s16  ;;  %v1113_v50 = vld [vmem:[%s3445_s6 + $0x10] sm:$0xff] }
 0xbf7   :  { %v2970_v51 = vpop.permute.xlu1 %726 }
 0xbf8   :  { %2118 = vmatmul.mubr.msk.f32.vlgmr.msra.gmra.mrb[4].mxu0 %vm80_vm1, %v2970_v51 }
 0xbf9   :  { %1089 = vmatprep.mubr.f32.mxu0 %v2660_v11  ;;  %2325 = vmatpush1.bf16.msra.mxu0 %v2324_v29 }
 0xbfa   :  { %2327 = vmatprep.subr.bf16.mxu0 %v2326_v37 }
 0xbfd   :  { %2329 = vmatpush1.bf16.msra.mxu0 %v2328_v39  ;;  %v1008_v39 = vld [vmem:[%s3443_s4 + $0xd8] sm:$0xff] }
 0xbfe   :  { %2331 = vmatprep.subr.bf16.mxu0 %v2330_v12  ;;  %v2346_v40 = vpack.c.bf16 %v1008_v39, %v1006_v38 }
 0xc01   :  { %2333 = vmatpush1.bf16.msra.mxu0 %v2332_v44 }
 0xccb   :  { %v796_v53 = vpop.f32.mrb[4].mxu0 }
 0xccc   :  { %v801_v54 = vadd.f32 %v2103_v52, %v796_v53  ;;  %v798_v56 = vpop.f32.mrb[5].mxu0  ;;  %v2334_v52 = vpack.c.bf16 %v996_v21, %v994_v16  ;;  %v998_v53 = vld [vmem:[%s3443_s4 + $0x88] sm:$0xff]  ;;  %v1007_v16 = vld [vmem:[%s3443_s4 + $0xd0] sm:$0xff] }
 0xccd   :  { %v808_v61 = vadd.f32 %v2843_v43, %v798_v56  ;;  %v3063_v56 = vpack.c.bf16 %v1113_v50, %v1111_v25  ;;  %v2348_v21 = vpack.c.bf16 %v1007_v16, %v1005_v15  ;;  %v1121_v25 = vld [vmem:[%s3445_s6 + $0x50] sm:$0xff]  ;;  %v1010_v50 = vld [vmem:[%s3443_s4 + $0xe8] sm:$0xff] }
 0xcce   :  { %v2119_v58 = vmul.f32 -1.442695, %v801_v54  ;;  %v1000_v54 = vld [vmem:[%s3443_s4 + $0x98] sm:$0xff]  ;;  %2335 = vmatprep.subr.bf16.mxu0 %v2334_v52 }
 0xccf   :  { %v1012_v52 = vld [vmem:[%s3443_s4 + $0xf8] sm:$0xff] }
 0xcd0   :  { %2551 = vpow2.f32 %v2119_v58  ;;  %v1116_v58 = vld [vmem:[%s3445_s6 + $0x28] sm:$0xff] }
 0xcda   :  { %v2552_v59 = vpop.eup %2551 }
 0xcdb   :  { %v805_v3 = vadd.f32 1.0, %v2552_v59  ;;  %v1118_v59 = vld [vmem:[%s3445_s6 + $0x38] sm:$0xff] }
 0xcdd   :  { %2553 = vrcp.f32 %v805_v3  ;;  %v1115_v3 = vld [vmem:[%s3445_s6 + $0x20] sm:$0xff] }
 0xce7   :  { %v2554_v62 = vpop.eup %2553 }
 0xce8   :  { %v809_v63 = vmul.f32 %v2554_v62, %v808_v61  ;;  %v815_v5 = vsub.f32 1.0, %v2554_v62  ;;  %v821_v8 = vmul.f32 %v2554_v62, %v2965_v49  ;;  %v3079_v61 = vpack.c.bf16 %v1118_v59, %v1116_v58  ;;  %v1011_v58 = vld [vmem:[%s3443_s4 + $0xf0] sm:$0xff]  ;;  %v1124_v59 = vld [vmem:[%s3445_s6 + $0x68] sm:$0xff] }
 0xcea   :  { %v813_v1 = vadd.f32 %v811_v60, %v809_v63  ;;  %v1117_v60 = vld [vmem:[%s3445_s6 + $0x30] sm:$0xff]  ;;  %v2336_v63 = vpack.c.bf16 %v995_v47, %v993_v46  ;;  %v3133_v47 = vpack.c.bf16 %v1121_v25, %v1119_v22 }
 0xceb   :  { %v3081_v62 = vpack.c.bf16 %v1117_v60, %v1115_v3  ;;  %v1126_v60 = vld [vmem:[%s3445_s6 + $0x78] sm:$0xff] }
 0xcec   :  { %2555 = vtanh.f32 %v813_v1  ;;  %v2338_v1 = vpack.c.bf16 %v1000_v54, %v998_v53  ;;  %2337 = vmatpush1.bf16.msra.mxu0 %v2336_v63  ;;  %v2350_v53 = vpack.c.bf16 %v1012_v52, %v1010_v50  ;;  %v1009_v54 = vld [vmem:[%s3443_s4 + $0xe0] sm:$0xff] }
 0xced   :  { %v2352_v3 = vpack.c.bf16 %v1011_v58, %v1009_v54  ;;  %v1123_v63 = vld [vmem:[%s3445_s6 + $0x60] sm:$0xff] }
 0xcee   :  { %2339 = vmatprep.subr.bf16.mxu0 %v2338_v1  ;;  %v1125_v1 = vld [vmem:[%s3445_s6 + $0x70] sm:$0xff] }
 0xcf6   :  { %v2556_v4 = vpop.eup %2555 }
 0xcf7   :  { %817 = vrot.lane.b32.xlu0 %v2556_v4, %s2662_s16  ;;  %v997_v4 = vld [vmem:[%s3443_s4 + $0x80] sm:$0xff] }
 0xd69   :  { %v818_v6 = vpop.permute.xlu0 %817 }
 0xd6a   :  { %v820_v9 = vmul.f32 %v818_v6, %v815_v5  ;;  %v999_v5 = vld [vmem:[%s3443_s4 + $0x90] sm:$0xff]  ;;  %v1002_v6 = vld [vmem:[%s3443_s4 + $0xa8] sm:$0xff] }
 0xd6c   :  { %v2981_v10 = vadd.f32 %v821_v8, %v820_v9  ;;  %v1004_v8 = vld [vmem:[%s3443_s4 + $0xb8] sm:$0xff]  ;;  %v2340_v9 = vpack.c.bf16 %v999_v5, %v997_v4  ;;  %v3161_v4 = vpack.c.bf16 %v1126_v60, %v1124_v59  ;;  %v3163_v5 = vpack.c.bf16 %v1125_v1, %v1123_v63 }
 0xd6e   :  { %v830_v13 = vrot.slane %v2981_v10, %v2822_v32  ;;  %2341 = vmatpush1.bf16.msra.mxu0 %v2340_v9 }
 0xd70   :  { %831 = vrot.lane.b32.xlu1 %v830_v13, %s2662_s16  ;;  %v2342_v13 = vpack.c.bf16 %v1004_v8, %v1002_v6  ;;  %v2122_v6 = vld [vmem:[%s3440_s1 + $0x4] sm:$0x3] }
 0xd72   :  { %2343 = vmatprep.subr.bf16.mxu0 %v2342_v13 }
 0xd74   :  { %1107 = vrot.lane.b32.xlu1 %v2123_v18, %s2659_s23  ;;  %v1001_v18 = vld [vmem:[%s3443_s4 + $0xa0] sm:$0xff] }
 0xd75   :  { %v2344_v23 = vpack.c.bf16 %v1003_v20, %v1001_v18 }
 0xd77   :  { %2345 = vmatpush1.bf16.msra.mxu0 %v2344_v23  ;;  %v931_v23 = vsel %vm80_vm1, %v2876_v19, %v2981_v10 }
 0xd78   :  { %2347 = vmatprep.subr.bf16.mxu0 %v2346_v40 }
 0xd7b   :  { %2349 = vmatpush1.bf16.msra.mxu0 %v2348_v21  ;;  %v1021_v21 = vsub.s32 1, %v2816_v30 }
 0xd7c   :  { %2351 = vmatprep.subr.bf16.mxu0 %v2350_v53 }
 0xd7f   :  { %2353 = vmatpush1.bf16.msra.mxu0 %v2352_v3 }
 0xd80   :  { %2387 = vmatprep.subr.bf16.mxu0 %v3052_v48 }
 0xde2   :  { %v2986_v14 = vpop.permute.xlu1 %831 }
 0xde3   :  { %2120 = vmatmul.mubr.msk.f32.vlgmr.msra.gmra.mrb[8].mxu1 %vm80_vm1, %v2986_v14 }
 0xde4   :  { %1195 = vmatprep.mubr.f32.mxu1 %v2660_v11  ;;  %2357 = vmatpush1.bf16.msra.mxu1 %v3063_v56 }
 0xde5   :  { %2359 = vmatprep.subr.bf16.mxu1 %v3079_v61 }
 0xde6   :  { %v1108_v8 = vpop.permute.xlu1 %1107 }
 0xde7   :  { %v1110_v9 = vsel %vm46_vm0, %v2122_v6, %v1108_v8  ;;  %v939_v6 = vsel %vm80_vm1, %v2970_v51, %v2895_v42  ;;  %v941_v8 = vsel %vm80_vm1, %v2986_v14, %v2871_v17  ;;  %v937_v42 = vsel %vm80_vm1, %v2947_v35, %v2919_v0 }
 0xde8   :  { %2361 = vmatpush1.bf16.msra.mxu1 %v3081_v62  ;;  %1225 = vrot.lane.b32.xlu1 %v1110_v9, %s2662_s16 }
 0xe5a   :  { %v1226_v58 = vpop.permute.xlu1 %1225 }
 0xeb6   :  { %v901_v26 = vpop.f32.mrb[8].mxu1 }
 0xeb7   :  { %v906_v27 = vadd.f32 %v2104_v24, %v901_v26  ;;  %v903_v28 = vpop.f32.mrb[9].mxu1 }
 0xeb8   :  { %v913_v37 = vadd.f32 %v2843_v43, %v903_v28  ;;  %v1120_v43 = vld [vmem:[%s3445_s6 + $0x48] sm:$0xff]  ;;  %v935_v28 = vsel %vm80_vm1, %v2924_v2, %v2942_v33  ;;  %v1017_v33 = vsub.s32 0, %v2816_v30 }
 0xeb9   :  { %v2121_v29 = vmul.f32 -1.442695, %v906_v27  ;;  %v3131_v46 = vpack.c.bf16 %v1122_v41, %v1120_v43  ;;  %v933_v27 = vsel %vm80_vm1, %v2900_v45, %v2965_v49  ;;  %v961_v19 = vrot.slane %v935_v28, 2  ;;  %v1013_v49 = vld [vmem:[%s3444_s5] sm:$0x3] }
 0xeba   :  { %v3223_v41 = vld [vmem:[%s3446_s7] ss:$0 sm:$0xff]  ;;  %v3225_v22 = vrot.slane %v1013_v49, %v1021_v21 }
 0xebb   :  { %2557 = vpow2.f32 %v2121_v29  ;;  %2363 = vmatprep.subr.bf16.mxu1 %v3131_v46 }
 0xebc   :  { %2365 = vmatpush1.bf16.msra.mxu1 %v3133_v47 }
 0xebd   :  { %2367 = vmatprep.subr.bf16.mxu1 %v3161_v4 }
 0xec0   :  { %2369 = vmatpush1.bf16.msra.mxu1 %v3163_v5 }
 0xec1   :  { %2371 = vmatprep.subr.bf16.mxu1 %v3052_v48 }
 0xec3   :  { %2124 = vmatmul.mubr.msk.f32.vlgmr.msra.gmra.mrb[10].mxu1 %vm80_vm1, %v1110_v9 }
 0xec4   :  { %2373 = vmatpush1.bf16.msra.mxu1 %v3063_v56  ;;  %1299 = vmatprep.mubr.f32.mxu1 %v2660_v11 }
 0xec5   :  { %v2558_v31 = vpop.eup %2557  ;;  %2375 = vmatprep.subr.bf16.mxu1 %v3079_v61 }
 0xec6   :  { %v910_v34 = vadd.f32 1.0, %v2558_v31  ;;  %v955_v31 = vrot.slane %v931_v23, 6 }
 0xec8   :  { %2559 = vrcp.f32 %v910_v34  ;;  %2377 = vmatpush1.bf16.msra.mxu1 %v3081_v62  ;;  %v958_v34 = vrot.slane %v933_v27, 4 }
 0xec9   :  { %2379 = vmatprep.subr.bf16.mxu1 %v3131_v46 }
 0xecc   :  { %2381 = vmatpush1.bf16.msra.mxu1 %v3133_v47 }
 0xecd   :  { %2383 = vmatprep.subr.bf16.mxu1 %v3161_v4 }
 0xed0   :  { %2385 = vmatpush1.bf16.msra.mxu1 %v3163_v5 }
 0xed1   :  { %2403 = vmatprep.subr.bf16.mxu1 %v3052_v48 }
 0xed2   :  { %v2560_v7 = vpop.eup %2559 }
 0xed3   :  { %v914_v12 = vmul.f32 %v2560_v7, %v913_v37  ;;  %v920_v18 = vsub.f32 1.0, %v2560_v7  ;;  %v926_v24 = vmul.f32 %v2560_v7, %v2981_v10  ;;  %v3213_v7 = vrot.slane %v1013_v49, %v1017_v33 }
 0xed5   :  { %v918_v44 = vadd.f32 %v916_v36, %v914_v12 }
 0xed7   :  { %2561 = vtanh.f32 %v918_v44 }
 0xee1   :  { %v2562_v13 = vpop.eup %2561 }
 0xee2   :  { %922 = vrot.lane.b32.xlu0 %v2562_v13, %s2662_s16  ;;  %v964_v13 = vrot.slane %v939_v6, 6 }
 0xee4   :  { %v978_v14 = vsel %vm972_vm2, %v937_v42, %v964_v13 }
 0xf54   :  { %v923_v20 = vpop.permute.xlu0 %922 }
 0xf55   :  { %v925_v26 = vmul.f32 %v923_v20, %v920_v18 }
 0xf57   :  { %v927_v29 = vadd.f32 %v926_v24, %v925_v26 }
 0xf59   :  { %v929_v36 = vsel %vm80_vm1, %v2852_v57, %v927_v29  ;;  %v3235_v1 = vrot.slane %v927_v29, %v2822_v32  ;;  %v967_v32 = vrot.slane %v941_v8, 4 }
 0xf5a   :  { %v973_v10 = vsel %vm972_vm2, %v929_v36, %v955_v31 }
 0xf5b   :  { %v975_v37 = vsel %vm974_vm4, %v973_v10, %v958_v34  ;;  %v979_v20 = vsel %vm974_vm4, %v978_v14, %v967_v32 }
 0xf5c   :  { %v977_v45 = vsel %vm976_vm3, %v975_v37, %v961_v19 }
 0xf5d   :  { %1090 = vmatmul.mubr.f32.vlgmr.msra.gmra.mrb[6].mxu0 %v977_v45 }
 0xf5e   :  { %1095 = vmatprep.mubr.f32.mxu0 %v2660_v11  ;;  %2389 = vmatpush1.bf16.msra.mxu0 %v3063_v56 }
 0xf5f   :  { %2391 = vmatprep.subr.bf16.mxu0 %v3079_v61 }
 0xf62   :  { %2393 = vmatpush1.bf16.msra.mxu0 %v3081_v62 }
 0xf63   :  { %2395 = vmatprep.subr.bf16.mxu0 %v3131_v46 }
 0xf66   :  { %2397 = vmatpush1.bf16.msra.mxu0 %v3133_v47 }
 0xf67   :  { %2399 = vmatprep.subr.bf16.mxu0 %v3161_v4 }
 0xf6a   :  { %2401 = vmatpush1.bf16.msra.mxu0 %v3163_v5 }
 0xf6b   :  { %2419 = vmatprep.subr.bf16.mxu0 %v3052_v48 }
 0xf96   :  { %v1197_v57 = vpop.f32.mrb[10].mxu1 }
 0xf97   :  { %v1199_v2 = vpop.f32.mrb[11].mxu1 }
 0xf98   :  { %v1215_v25 = vadd.f32 %v3223_v41, %v1199_v2 }
0x1030   :  { %v1091_v38 = vpop.f32.mrb[6].mxu0 }
0x1031   :  { %v3216_v39 = vadd.f32 %v1091_v38, %v3213_v7  ;;  %v1093_v12 = vpop.f32.mrb[7].mxu0 }
0x1032   :  { %v3229_v50 = vadd.f32 %v1093_v12, %v3225_v22 }
0x1033   :  { %v1202_v40 = vadd.f32 %v1197_v57, %v3216_v39 }
0x1035   :  { %v2125_v15 = vmul.f32 -1.442695, %v1202_v40 }
0x1037   :  { %2563 = vpow2.f32 %v2125_v15 }
0x1041   :  { %v2564_v16 = vpop.eup %2563 }
0x1042   :  { %v1206_v43 = vadd.f32 1.0, %v2564_v16 }
0x1044   :  { %2565 = vrcp.f32 %v1206_v43 }
0x104e   :  { %v2566_v44 = vpop.eup %2565 }
0x104f   :  { %v1216_v52 = vmul.f32 %v2566_v44, %v1215_v25  ;;  %v1219_v30 = vsub.f32 1.0, %v2566_v44  ;;  %v1228_v3 = vmul.f32 %v2566_v44, %v1226_v58 }
0x1051   :  { %v1217_v53 = vadd.f32 %v1216_v52, %v3229_v50 }
0x1053   :  { %2567 = vtanh.f32 %v1217_v53 }
0x105d   :  { %v2568_v54 = vpop.eup %2567 }
0x105e   :  { %1221 = vrot.lane.b32.xlu0 %v2568_v54, %s2662_s16 }
0x10d0   :  { %v1222_v59 = vpop.permute.xlu0 %1221 }
0x10d1   :  { %v1224_v60 = vmul.f32 %v1222_v59, %v1219_v30 }
0x10d3   :  { %v1229_v63 = vadd.f32 %v1228_v3, %v1224_v60 }
0x10d5   :  { %1231 = vrot.lane.b32.xlu0 %v1229_v63, %s2662_s16  ;;  %v1329_v36 = vrot.slane %v1229_v63, 6 }
0x10d9   :  { %950 = vrot.lane.b32.xlu0 %v3235_v1, %s2662_s16 }
0x1147   :  { %v3245_v9 = vpop.permute.xlu0 %1231 }
0x1148   :  { %2127 = vmatmul.mubr.msk.f32.vlgmr.msra.gmra.mrb[12].mxu1 %vm80_vm1, %v3245_v9 }
0x1149   :  { %2405 = vmatpush1.bf16.msra.mxu1 %v3063_v56  ;;  %1507 = vmatprep.mubr.f32.mxu1 %v2660_v11 }
0x114a   :  { %2407 = vmatprep.subr.bf16.mxu1 %v3079_v61 }
0x114b   :  { %v951_v18 = vpop.permute.xlu0 %950 }
0x114c   :  { %v953_v17 = vsel %vm80_vm1, %v951_v18, %v2847_v55  ;;  %1950 = vst.msk [vmem:[#allocation4] sm:$0x3] %vm1949_vm5, %v951_v18 }
0x114d   :  { %v970_v51 = vrot.slane %v953_v17, 2  ;;  %2409 = vmatpush1.bf16.msra.mxu1 %v3081_v62 }
0x114e   :  { %2411 = vmatprep.subr.bf16.mxu1 %v3131_v46 }
0x114f   :  { %v980_v23 = vsel %vm976_vm3, %v979_v20, %v970_v51 }
0x1150   :  { %1096 = vmatmul.mubr.f32.gmra.mrb[8].mxu0 %v980_v23 }
0x1151   :  { %1403 = vmatprep.mubr.f32.mxu0 %v2660_v11  ;;  %2413 = vmatpush1.bf16.msra.mxu1 %v3133_v47 }
0x1152   :  { %2415 = vmatprep.subr.bf16.mxu1 %v3161_v4 }
0x1155   :  { %2417 = vmatpush1.bf16.msra.mxu1 %v3163_v5 }
0x1156   :  { %2435 = vmatprep.subr.bf16.mxu1 %v3052_v48 }
0x121b   :  { %v1301_v55 = vpop.f32.mrb[12].mxu1 }
0x121c   :  { %v1307_v0 = vrot.slane %v1301_v55, 6  ;;  %v1303_v35 = vpop.f32.mrb[13].mxu1 }
0x121d   :  { %v1316_v34 = vadd.f32 %v3223_v41, %v1303_v35 }
0x121e   :  { %v1309_v24 = vadd.f32 %v1307_v0, %v3216_v39 }
0x121f   :  { %v1318_v19 = vrot.slane %v1316_v34, 6 }
0x1220   :  { %v2128_v26 = vmul.f32 -1.442695, %v1309_v24 }
0x1222   :  { %2569 = vpow2.f32 %v2128_v26 }
0x1223   :  { %v3269_v27 = vpop.f32.mrb[8].mxu0 }
0x1224   :  { %v3271_v28 = vpop.f32.mrb[9].mxu0 }
0x122c   :  { %v2570_v29 = vpop.eup %2569 }
0x122d   :  { %v1313_v31 = vadd.f32 1.0, %v2570_v29 }
0x122f   :  { %2571 = vrcp.f32 %v1313_v31 }
0x1239   :  { %v2572_v10 = vpop.eup %2571 }
0x123a   :  { %v1320_v37 = vmul.f32 %v2572_v10, %v1318_v19  ;;  %v1331_v45 = vmul.f32 %v2572_v10, %v1329_v36  ;;  %v1323_v33 = vsub.f32 1.0, %v2572_v10 }
0x123c   :  { %v1321_v57 = vadd.f32 %v1320_v37, %v3229_v50 }
0x123e   :  { %2573 = vtanh.f32 %v1321_v57 }
0x1248   :  { %v2574_v2 = vpop.eup %2573 }
0x1249   :  { %1325 = vrot.lane.b32.xlu1 %v2574_v2, %s2662_s16 }
0x12bb   :  { %v1326_v49 = vpop.permute.xlu1 %1325 }
0x12bc   :  { %v1328_v38 = vmul.f32 %v1326_v49, %v1323_v33 }
0x12be   :  { %v1332_v12 = vadd.f32 %v1331_v45, %v1328_v38 }
0x12c0   :  { %v1334_v40 = vrot.slane %v1332_v12, 2  ;;  %v1433_v30 = vrot.slane %v1332_v12, 6 }
0x12c2   :  { %1335 = vrot.lane.b32.xlu1 %v1334_v40, %s2662_s16 }
0x1334   :  { %v1336_v15 = vpop.permute.xlu1 %1335 }
0x1335   :  { %2129 = vmatmul.mubr.msk.f32.vlgmr.msra.gmra.mrb[10].mxu0 %vm80_vm1, %v1336_v15 }
0x1336   :  { %2421 = vmatpush1.bf16.msra.mxu0 %v3063_v56  ;;  %1611 = vmatprep.mubr.f32.mxu0 %v2660_v11 }
0x1337   :  { %2423 = vmatprep.subr.bf16.mxu0 %v3079_v61 }
0x133a   :  { %2425 = vmatpush1.bf16.msra.mxu0 %v3081_v62 }
0x133b   :  { %2427 = vmatprep.subr.bf16.mxu0 %v3131_v46 }
0x133e   :  { %2429 = vmatpush1.bf16.msra.mxu0 %v3133_v47 }
0x133f   :  { %2431 = vmatprep.subr.bf16.mxu0 %v3161_v4 }
0x1342   :  { %2433 = vmatpush1.bf16.msra.mxu0 %v3163_v5 }
0x1343   :  { %2451 = vmatprep.subr.bf16.mxu0 %v3052_v48 }
0x1408   :  { %v1405_v16 = vpop.f32.mrb[10].mxu0 }
0x1409   :  { %v1411_v43 = vrot.slane %v1405_v16, 4  ;;  %v1407_v21 = vpop.f32.mrb[11].mxu0 }
0x140a   :  { %v1420_v54 = vadd.f32 %v3223_v41, %v1407_v21  ;;  %v3324_v21 = vadd.f32 %v3271_v28, %v3225_v22 }
0x140b   :  { %v1413_v25 = vadd.f32 %v1411_v43, %v3216_v39 }
0x140c   :  { %v1422_v58 = vrot.slane %v1420_v54, 4 }
0x140d   :  { %v2130_v44 = vmul.f32 -1.442695, %v1413_v25 }
0x140f   :  { %2575 = vpow2.f32 %v2130_v44 }
0x1419   :  { %v2576_v52 = vpop.eup %2575 }
0x141a   :  { %v1417_v53 = vadd.f32 1.0, %v2576_v52 }
0x141c   :  { %2577 = vrcp.f32 %v1417_v53 }
0x1426   :  { %v2578_v59 = vpop.eup %2577 }
0x1427   :  { %v1424_v3 = vmul.f32 %v2578_v59, %v1422_v58  ;;  %v1435_v60 = vmul.f32 %v2578_v59, %v1433_v30  ;;  %v1427_v8 = vsub.f32 1.0, %v2578_v59 }
0x1429   :  { %v1425_v63 = vadd.f32 %v1424_v3, %v3229_v50 }
0x142b   :  { %2579 = vtanh.f32 %v1425_v63 }
0x1435   :  { %v2580_v6 = vpop.eup %2579 }
0x1436   :  { %1429 = vrot.lane.b32.xlu0 %v2580_v6, %s2662_s16 }
0x14a8   :  { %v1430_v13 = vpop.permute.xlu0 %1429 }
0x14a9   :  { %v1432_v32 = vmul.f32 %v1430_v13, %v1427_v8 }
0x14ab   :  { %v1436_v18 = vadd.f32 %v1435_v60, %v1432_v32 }
0x14ad   :  { %v1438_v42 = vrot.slane %v1436_v18, 4  ;;  %v1537_v26 = vrot.slane %v1436_v18, 6 }
0x14af   :  { %1439 = vrot.lane.b32.xlu1 %v1438_v42, %s2662_s16 }
0x1521   :  { %v1440_v17 = vpop.permute.xlu1 %1439 }
0x1522   :  { %2131 = vmatmul.mubr.msk.f32.vlgmr.msra.gmra.mrb[14].mxu1 %vm80_vm1, %v1440_v17 }
0x1523   :  { %2437 = vmatpush1.bf16.msra.mxu1 %v3063_v56  ;;  %1707 = vmatprep.mubr.f32.mxu1 %v2660_v11 }
0x1524   :  { %2439 = vmatprep.subr.bf16.mxu1 %v3079_v61 }
0x1527   :  { %2441 = vmatpush1.bf16.msra.mxu1 %v3081_v62 }
0x1528   :  { %2443 = vmatprep.subr.bf16.mxu1 %v3131_v46 }
0x152b   :  { %2445 = vmatpush1.bf16.msra.mxu1 %v3133_v47 }
0x152c   :  { %2447 = vmatprep.subr.bf16.mxu1 %v3161_v4 }
0x152f   :  { %2449 = vmatpush1.bf16.msra.mxu1 %v3163_v5 }
0x1530   :  { %2467 = vmatprep.subr.bf16.mxu1 %v3052_v48 }
0x15f5   :  { %v1509_v51 = vpop.f32.mrb[14].mxu1 }
0x15f6   :  { %v1515_v14 = vrot.slane %v1509_v51, 2  ;;  %v1511_v20 = vpop.f32.mrb[15].mxu1 }
0x15f7   :  { %v1524_v24 = vadd.f32 %v3223_v41, %v1511_v20 }
0x15f8   :  { %v1517_v23 = vadd.f32 %v1515_v14, %v3216_v39 }
0x15f9   :  { %v1526_v29 = vrot.slane %v1524_v24, 2 }
0x15fa   :  { %v2132_v55 = vmul.f32 -1.442695, %v1517_v23 }
0x15fc   :  { %2581 = vpow2.f32 %v2132_v55 }
0x1606   :  { %v2582_v0 = vpop.eup %2581 }
0x1607   :  { %v1521_v35 = vadd.f32 1.0, %v2582_v0 }
0x1609   :  { %2583 = vrcp.f32 %v1521_v35 }
0x1613   :  { %v2584_v31 = vpop.eup %2583 }
0x1614   :  { %v1528_v34 = vmul.f32 %v2584_v31, %v1526_v29  ;;  %v1539_v36 = vmul.f32 %v2584_v31, %v1537_v26  ;;  %v1531_v10 = vsub.f32 1.0, %v2584_v31 }
0x1616   :  { %v1529_v19 = vadd.f32 %v1528_v34, %v3229_v50  ;;  %v3318_v50 = vadd.f32 %v3269_v27, %v3213_v7 }
0x1618   :  { %2585 = vtanh.f32 %v1529_v19 }
0x1622   :  { %v2586_v48 = vpop.eup %2585 }
0x1623   :  { %1533 = vrot.lane.b32.xlu0 %v2586_v48, %s2662_s16 }
0x1695   :  { %v1534_v39 = vpop.permute.xlu0 %1533 }
0x1696   :  { %v1536_v37 = vmul.f32 %v1534_v39, %v1531_v10 }
0x1698   :  { %v1540_v45 = vadd.f32 %v1539_v36, %v1536_v37 }
0x169a   :  { %v1542_v57 = vrot.slane %v1540_v45, 6 }
0x169c   :  { %1543 = vrot.lane.b32.xlu1 %v1542_v57, %s2662_s16 }
0x170e   :  { %v1544_v2 = vpop.permute.xlu1 %1543 }
0x170f   :  { %2133 = vmatmul.mubr.msk.f32.vlgmr.msra.gmra.mrb[12].mxu0 %vm80_vm1, %v1544_v2 }
0x1710   :  { %2453 = vmatpush1.bf16.msra.mxu0 %v3063_v56  ;;  %1811 = vmatprep.mubr.f32.mxu0 %v2660_v11 }
0x1711   :  { %2455 = vmatprep.subr.bf16.mxu0 %v3079_v61 }
0x1714   :  { %2457 = vmatpush1.bf16.msra.mxu0 %v3081_v62 }
0x1715   :  { %2459 = vmatprep.subr.bf16.mxu0 %v3131_v46 }
0x1718   :  { %2461 = vmatpush1.bf16.msra.mxu0 %v3133_v47 }
0x1719   :  { %2463 = vmatprep.subr.bf16.mxu0 %v3161_v4 }
0x171c   :  { %2465 = vmatpush1.bf16.msra.mxu0 %v3163_v5 }
0x17e2   :  { %v1613_v33 = vpop.f32.mrb[12].mxu0 }
0x17e3   :  { %v1618_v49 = vadd.f32 %v1613_v33, %v3318_v50  ;;  %v1615_v38 = vpop.f32.mrb[13].mxu0 }
0x17e4   :  { %v1625_v16 = vadd.f32 %v3223_v41, %v1615_v38  ;;  %v1972_v38 = vld [vmem:[%s3447_s8] sm:$0xff] }
0x17e5   :  { %v2134_v12 = vmul.f32 -1.442695, %v1618_v49 }
0x17e7   :  { %2587 = vpow2.f32 %v2134_v12  ;;  %v1973_v12 = vld [vmem:[%s3447_s8 + $0x8] sm:$0xff] }
0x17f1   :  { %v2588_v40 = vpop.eup %2587 }
0x17f2   :  { %v1622_v15 = vadd.f32 1.0, %v2588_v40  ;;  %v1974_v40 = vld [vmem:[%s3447_s8 + $0x10] sm:$0xff] }
0x17f4   :  { %2589 = vrcp.f32 %v1622_v15  ;;  %v2663_v15 = vmov 0.0|0.0  }
0x17f5   :  { %2482 = vmatprep.subr.bf16.mxu0 %v2663_v15 }
0x17fe   :  { %v2590_v43 = vpop.eup %2589 }
0x17ff   :  { %v1626_v25 = vmul.f32 %v2590_v43, %v1625_v16  ;;  %v1629_v44 = vsub.f32 1.0, %v2590_v43  ;;  %v1636_v53 = vmul.f32 %v2590_v43, %v1542_v57  ;;  %v1975_v16 = vld [vmem:[%s3447_s8 + $0x18] sm:$0xff] }
0x1800   :  { %v2486_v43 = vpack.c.bf16 %v1975_v16, %v1974_v40 }
0x1801   :  { %v1627_v7 = vadd.f32 %v1626_v25, %v3324_v21  ;;  %v1976_v25 = vld [vmem:[%s3447_s8 + $0x20] sm:$0xff] }
0x1803   :  { %2591 = vtanh.f32 %v1627_v7  ;;  %v1977_v7 = vld [vmem:[%s3447_s8 + $0x28] sm:$0xff] }
0x180d   :  { %v2592_v27 = vpop.eup %2591 }
0x180e   :  { %1631 = vrot.lane.b32.xlu0 %v2592_v27, %s2662_s16  ;;  %v2489_v27 = vpack.c.bf16 %v1977_v7, %v1976_v25 }
0x1880   :  { %v1632_v52 = vpop.permute.xlu0 %1631 }
0x1881   :  { %v1634_v54 = vmul.f32 %v1632_v52, %v1629_v44  ;;  %v1978_v44 = vld [vmem:[%s3447_s8 + $0x30] sm:$0xff]  ;;  %v1979_v52 = vld [vmem:[%s3447_s8 + $0x38] sm:$0xff] }
0x1883   :  { %v1637_v30 = vadd.f32 %v1636_v53, %v1634_v54  ;;  %v2492_v53 = vpack.c.bf16 %v1979_v52, %v1978_v44  ;;  %v1980_v54 = vld [vmem:[%s3447_s8 + $0x40] sm:$0xff] }
0x1885   :  { %1639 = vrot.lane.b32.xlu1 %v1637_v30, %s2662_s16 }
0x18f7   :  { %v1640_v58 = vpop.permute.xlu1 %1639 }
0x18f8   :  { %2135 = vmatmul.mubr.msk.f32.vlgmr.msra.gmra.mrb[16].mxu1 %vm80_vm1, %v1640_v58 }
0x18f9   :  { %2469 = vmatpush1.bf16.msra.mxu1 %v3063_v56  ;;  %1915 = vmatprep.mubr.f32.mxu1 %v2660_v11 }
0x18fa   :  { %2471 = vmatprep.subr.bf16.mxu1 %v3079_v61 }
0x18fd   :  { %2473 = vmatpush1.bf16.msra.mxu1 %v3081_v62  ;;  %v1737_v62 = vrot.slane %v1637_v30, 6  ;;  %v1981_v30 = vld [vmem:[%s3447_s8 + $0x48] sm:$0xff] }
0x18fe   :  { %2475 = vmatprep.subr.bf16.mxu1 %v3131_v46  ;;  %v2495_v58 = vpack.c.bf16 %v1981_v30, %v1980_v54 }
0x1901   :  { %2477 = vmatpush1.bf16.msra.mxu1 %v3133_v47 }
0x1902   :  { %2479 = vmatprep.subr.bf16.mxu1 %v3161_v4 }
0x1905   :  { %2481 = vmatpush1.bf16.msra.mxu1 %v3163_v5 }
0x19cb   :  { %v1709_v22 = vpop.f32.mrb[16].mxu1 }
0x19cc   :  { %v1715_v28 = vrot.slane %v1709_v22, 6  ;;  %v1711_v59 = vpop.f32.mrb[17].mxu1  ;;  %v1982_v22 = vld [vmem:[%s3447_s8 + $0x50] sm:$0xff] }
0x19cd   :  { %v1724_v61 = vadd.f32 %v3223_v41, %v1711_v59 }
0x19ce   :  { %v1717_v3 = vadd.f32 %v1715_v28, %v3318_v50  ;;  %v1983_v28 = vld [vmem:[%s3447_s8 + $0x58] sm:$0xff] }
0x19cf   :  { %v1726_v46 = vrot.slane %v1724_v61, 6  ;;  %v2498_v59 = vpack.c.bf16 %v1983_v28, %v1982_v22 }
0x19d0   :  { %v2136_v56 = vmul.f32 -1.442695, %v1717_v3 }
0x19d2   :  { %2593 = vpow2.f32 %v2136_v56 }
0x19dc   :  { %v2594_v60 = vpop.eup %2593 }
0x19dd   :  { %v1721_v63 = vadd.f32 1.0, %v2594_v60 }
0x19df   :  { %2595 = vrcp.f32 %v1721_v63 }
0x19e9   :  { %v2596_v6 = vpop.eup %2595 }
0x19ea   :  { %v1728_v47 = vmul.f32 %v2596_v6, %v1726_v46  ;;  %v1739_v8 = vmul.f32 %v2596_v6, %v1737_v62  ;;  %v1731_v13 = vsub.f32 1.0, %v2596_v6 }
0x19ec   :  { %v1729_v4 = vadd.f32 %v1728_v47, %v3324_v21 }
0x19ee   :  { %2597 = vtanh.f32 %v1729_v4 }
0x19f8   :  { %v2598_v5 = vpop.eup %2597 }
0x19f9   :  { %1733 = vrot.lane.b32.xlu0 %v2598_v5, %s2662_s16  ;;  %v1984_v5 = vld [vmem:[%s3447_s8 + $0x60] sm:$0xff] }
0x1a6b   :  { %v1734_v32 = vpop.permute.xlu0 %1733 }
0x1a6c   :  { %v1736_v18 = vmul.f32 %v1734_v32, %v1731_v13  ;;  %v1985_v13 = vld [vmem:[%s3447_s8 + $0x68] sm:$0xff] }
0x1a6e   :  { %v1740_v42 = vadd.f32 %v1739_v8, %v1736_v18  ;;  %v2501_v18 = vpack.c.bf16 %v1985_v13, %v1984_v5 }
0x1a70   :  { %v1742_v17 = vrot.slane %v1740_v42, 2  ;;  %v1841_v29 = vrot.slane %v1740_v42, 6 }
0x1a72   :  { %1743 = vrot.lane.b32.xlu1 %v1742_v17, %s2662_s16  ;;  %v1987_v17 = vld [vmem:[%s3447_s8 + $0x78] sm:$0xff] }
0x1ae4   :  { %v1744_v51 = vpop.permute.xlu1 %1743 }
0x1ae5   :  { %2137 = vmatmul.mubr.msk.f32.vlgmr.msra.gmra.mrb[14].mxu0 %vm80_vm1, %v1744_v51 }
0x1ae6   :  { %2191 = vmatprep.mubr.msk.f32.mxu0 %vm2664_vm6, %v2660_v11 }
0x1bb8   :  { %v1813_v14 = vpop.f32.mrb[14].mxu0 }
0x1bb9   :  { %v1819_v20 = vrot.slane %v1813_v14, 4  ;;  %v1815_v23 = vpop.f32.mrb[15].mxu0 }
0x1bba   :  { %v1828_v26 = vadd.f32 %v3223_v41, %v1815_v23 }
0x1bbb   :  { %v1821_v55 = vadd.f32 %v1819_v20, %v3318_v50 }
0x1bbc   :  { %v1830_v31 = vrot.slane %v1828_v26, 4 }
0x1bbd   :  { %v2138_v0 = vmul.f32 -1.442695, %v1821_v55 }
0x1bbf   :  { %2599 = vpow2.f32 %v2138_v0 }
0x1bc9   :  { %v2600_v35 = vpop.eup %2599 }
0x1bca   :  { %v1825_v24 = vadd.f32 1.0, %v2600_v35 }
0x1bcc   :  { %2601 = vrcp.f32 %v1825_v24 }
0x1bd6   :  { %v2602_v34 = vpop.eup %2601 }
0x1bd7   :  { %v1832_v36 = vmul.f32 %v2602_v34, %v1830_v31  ;;  %v1843_v19 = vmul.f32 %v2602_v34, %v1841_v29  ;;  %v1835_v39 = vsub.f32 1.0, %v2602_v34 }
0x1bd9   :  { %v1833_v48 = vadd.f32 %v1832_v36, %v3324_v21 }
0x1bdb   :  { %2603 = vtanh.f32 %v1833_v48 }
0x1be5   :  { %v2604_v10 = vpop.eup %2603 }
0x1be6   :  { %1837 = vrot.lane.b32.xlu0 %v2604_v10, %s2662_s16 }
0x1c58   :  { %v1838_v37 = vpop.permute.xlu0 %1837 }
0x1c59   :  { %v1840_v45 = vmul.f32 %v1838_v37, %v1835_v39 }
0x1c5b   :  { %v1844_v57 = vadd.f32 %v1843_v19, %v1840_v45 }
0x1c5d   :  { %v1846_v2 = vrot.slane %v1844_v57, 4  ;;  %v1945_v47 = vrot.slane %v1844_v57, 6 }
0x1c5f   :  { %1847 = vrot.lane.b32.xlu1 %v1846_v2, %s2662_s16 }
0x1c63   :  { %1951 = vrot.lane.b32.xlu1 %v3235_v1, %s2659_s23  ;;  %v2483_v1 = vpack.c.bf16 %v1973_v12, %v1972_v38 }
0x1c65   :  { %2484 = vmatpush3.bf16.msra.mxu0 %v2483_v1 }
0x1c66   :  { %2485 = vmatprep.subr.bf16.mxu0 %v2663_v15 }
0x1c69   :  { %2487 = vmatpush3.bf16.msra.mxu0 %v2486_v43 }
0x1c6a   :  { %2488 = vmatprep.subr.bf16.mxu0 %v2663_v15 }
0x1c6d   :  { %2490 = vmatpush3.bf16.msra.mxu0 %v2489_v27 }
0x1c6e   :  { %2491 = vmatprep.subr.bf16.mxu0 %v2663_v15 }
0x1c71   :  { %2493 = vmatpush3.bf16.msra.mxu0 %v2492_v53 }
0x1c72   :  { %2494 = vmatprep.subr.bf16.mxu0 %v2663_v15 }
0x1c75   :  { %2496 = vmatpush3.bf16.msra.mxu0 %v2495_v58 }
0x1c76   :  { %2497 = vmatprep.subr.bf16.mxu0 %v2663_v15 }
0x1c79   :  { %2499 = vmatpush3.bf16.msra.mxu0 %v2498_v59 }
0x1c7a   :  { %2500 = vmatprep.subr.bf16.mxu0 %v2663_v15 }
0x1c7d   :  { %2502 = vmatpush3.bf16.msra.mxu0 %v2501_v18 }
0x1c7e   :  { %2503 = vmatprep.subr.bf16.mxu0 %v2663_v15 }
0x1cd1   :  { %v1848_v33 = vpop.permute.xlu1 %1847 }
0x1cd2   :  { %2139 = vmatmul.mubr.msk.f32.vlgmr.msra.gmra.mrb[18].mxu1 %vm80_vm1, %v1848_v33 }
0x1cd5   :  { %v1952_v49 = vpop.permute.xlu1 %1951 }
0x1cd6   :  { %1955 = vst.msk [vmem:[#allocation4 + $0x2] sm:$0x3] %vm1949_vm5, %v1952_v49 }
0x1da5   :  { %v1917_v3 = vpop.f32.mrb[18].mxu1 }
0x1da6   :  { %v1923_v56 = vrot.slane %v1917_v3, 2  ;;  %v1919_v60 = vpop.f32.mrb[19].mxu1 }
0x1da7   :  { %v1932_v6 = vadd.f32 %v3223_v41, %v1919_v60  ;;  %v1986_v41 = vld [vmem:[%s3447_s8 + $0x70] sm:$0xff]  ;;  %s2665_s8 = smov [#allocation4]  }
0x1da8   :  { %v1925_v63 = vadd.f32 %v1923_v56, %v3318_v50  ;;  %v2504_v51 = vpack.c.bf16 %v1987_v17, %v1986_v41  ;;  %s2082_s25 = sshll.u32 %s2665_s8, 4  ;;  %s2083_s25 = int_to_ptr.vmem [resolvable:$true] %s2082_s25 }
0x1da9   :  { %v1934_v8 = vrot.slane %v1932_v6, 2  ;;  %s2611_s26 = scalar_lea.vmem %s2083_s25, 128  ;;  %p2616_p1 = scmp.lt.s32.totalorder %s2083_s25, %s2083_s25 }
0x1daa   :  { %v2140_v61 = vmul.f32 -1.442695, %v1925_v63  ;;  %2505 = vmatpush3.bf16.msra.mxu0 %v2504_v51  ;;  %p2612_p0 = scmp.ne.s32.totalorder %s2083_s25, %s2611_s26  ;;  %p2617_p2 = scmp.lt.s32.totalorder %s2611_s26, %s2611_s26 }
0x1dac   :  { %2605 = vpow2.f32 %v2140_v61  ;;  %p2618_p3 = por %p2617_p2, %p2616_p1 }
0x1dae   :  { %p2619_p4 = pnand %p2618_p3, %p2612_p0 }
0x1db6   :  { %v2606_v62 = vpop.eup %2605 }
0x1db7   :  { %v1929_v46 = vadd.f32 1.0, %v2606_v62 }
0x1db9   :  { %2607 = vrcp.f32 %v1929_v46 }
0x1dc3   :  { %v2608_v4 = vpop.eup %2607 }
0x1dc4   :  { %v1936_v32 = vmul.f32 %v2608_v4, %v1934_v8  ;;  %v1947_v50 = vmul.f32 %v2608_v4, %v1945_v47 }
0x1dc6   :  { %v1937_v42 = vadd.f32 %v1936_v32, %v3324_v21  ;;  %v1939_v21 = vsub.f32 1.0, %v2608_v4 }
0x1dc8   :  { %2609 = vtanh.f32 %v1937_v42 }
0x1dd2   :  { %v2610_v14 = vpop.eup %2609 }
0x1dd3   :  { %1941 = vrot.lane.b32.xlu0 %v2610_v14, %s2662_s16 }
0x1e45   :  { %v1942_v20 = vpop.permute.xlu0 %1941 }
0x1e46   :  { %v1944_v23 = vmul.f32 %v1942_v20, %v1939_v21 }
0x1e48   :  { %v1948_v55 = vadd.f32 %v1947_v50, %v1944_v23 }
0x1e4a   :  { %v1969_v0 = vrot.slane %v1948_v55, 6  ;;  %1963 = vrot.lane.b32.xlu1 %v1948_v55, %s2659_s23  ;;  %1957 = vrot.lane.b32.xlu0 %v1948_v55, %s2662_s16 }
0x1e4c   :  { %v1971_v35 = vsel %vm80_vm1, %v3245_v9, %v1969_v0 }
0x1e4d   :  { %2192 = vmatmul.mubr.f32.vlgmr.msra.gmra.mrb[16].mxu0 %v1971_v35 }
0x1ebc   :  { %v1958_v11 = vpop.permute.xlu0 %1957  ;;  %v1964_v24 = vpop.permute.xlu1 %1963 }
0x1ebd   :  { %1962 = vst.msk [vmem:[#allocation4 - $0x2] sm:$0xc0] %vm1961_vm7, %v1958_v11  ;;  %1967 = vst.msk [vmem:[#allocation4] sm:$0xc0] %vm1961_vm7, %v1964_v24 }
0x1ebe   :  { %2622 = shalt.err (!%p2619_p4)
}
0x1ebf   :  { %s2623_s28 = scalar_lea.hbm %s3450_s11, 128 }
0x1ec0   :  { %p2624_p5 = scmp.ne.s32.totalorder %s3450_s11, %s2623_s28  ;;  %p2627_p6 = scmp.lt.u32.totalorder %s2623_s28, %s3450_s11 }
0x1ec2   :  { %p2629_p7 = pnand %p2627_p6, %p2624_p5 }
0x1ec4   :  { %2632 = shalt.err (!%p2629_p7)
}
0x1ec5   :  { %s2666_s13 = smov 2   ;;  %v2141_v9 = vld [vmem:[%s3448_s9] ss:$0 sm:$0xff]  ;;  %s2667_s17 = smov [#allocation2]   ;;  %vm2065_vm8 = vcmask 9216  }
0x1ec6   :  { %2088 = dma.vmem_to_hbm [thread:$0]  %s2083_s25, 128, %s3450_s11, [#allocation5], %s2659_s23, %s2659_s23, %s2666_s13  }
0x1ec7   :  { %s2073_s1 = sshll.u32 %s2667_s17, 4  ;;  %s2074_s1 = int_to_ptr.vmem [resolvable:$true] %s2073_s1 }
0x1ec8   :  { %s2633_s6 = scalar_lea.vmem %s2074_s1, 32  ;;  %p2638_p9 = scmp.lt.s32.totalorder %s2074_s1, %s2074_s1 }
0x1ec9   :  { %p2634_p8 = scmp.ne.s32.totalorder %s2074_s1, %s2633_s6  ;;  %p2639_p10 = scmp.lt.s32.totalorder %s2633_s6, %s2633_s6 }
0x1ecb   :  { %p2640_p11 = por %p2639_p10, %p2638_p9 }
0x1ecd   :  { %p2641_p12 = pnand %p2640_p11, %p2634_p8 }
0x1f20   :  { %v2061_v26 = vpop.f32.mrb[16].mxu0 }
0x1f21   :  { %v2062_v29 = vadd.f32 %v2141_v9, %v2061_v26  ;;  %v2193_v31 = vpop.f32.mrb[17].mxu0 }
0x1f23   :  { %2066 = vst.msk [vmem:[#allocation2] sm:$0x3] %vm2065_vm8, %v2062_v29 }
0x1f24   :  { %2644 = shalt.err (!%p2641_p12)
}
0x1f25   :  { %s2645_s18 = scalar_lea.hbm %s3449_s10, 32 }
0x1f26   :  { %p2646_p13 = scmp.ne.s32.totalorder %s3449_s10, %s2645_s18  ;;  %p2649_p0 = scmp.lt.u32.totalorder %s2645_s18, %s3449_s10 }
0x1f28   :  { %p2651_p1 = pnand %p2649_p0, %p2646_p13 }
0x1f2a   :  { %2654 = shalt.err (!%p2651_p1)
}
0x1f2b   :  { %2076 = dma.vmem_to_hbm [thread:$0]  %s2074_s1, 32, %s3449_s10, [#allocation3]  }
0x1f2c   :  { %2655 = dma.done.wait [#allocation3], 32  }
0x1f2d   :  { %2656 = vsyncadd [#allocation3], 4294967264 }
0x1f2e   :  { %2657 = dma.done.wait [#allocation5], 128  }
0x1f2f   :  { %2658 = vsyncadd [#allocation5], 4294967168 }
0x1f30   :  { %2095 = vsyncpa [#allocation3], 1 }
0x1f31   :  { %2096 = vsyncpa [#allocation5], 1 }

</bundles_post_ra>
